<compile_context>
chip_gen: v7x
topology: tpu7x:2x2x1
jax: 0.10.0
libtpu: 0.0.40
codegen_flags: <defaults>
</compile_context>

<pallas_src>
import functools

import jax
import jax.numpy as jnp
from jax.experimental import pallas as pl
from jax.experimental.pallas import tpu as pltpu

BN_EPS = 1e-5
LEAKY_SLOPE = 0.01
LANE = 128


def _round_up(n, m=LANE):
    return ((n + m - 1) // m) * m


# ----------------------------------------------------------------------------
# Kernel helpers
# ----------------------------------------------------------------------------
def _bn_affine(z, gamma, beta, inv_b):
    """Train-mode BatchNorm1d with gamma folded into the scale and a single FMA.

    One-pass stats: the two column reductions (sum z, sum z*z) have no serial
    dependency, and the (z - mean) subtraction pass is eliminated.
    Padded columns: z == 0 -> mean = var = 0 -> scale = gamma_pad * rsqrt(eps) = 0,
    shift = 0, so pad lanes stay exactly 0."""
    s1 = jnp.sum(z, axis=0, keepdims=True)
    s2 = jnp.sum(z * z, axis=0, keepdims=True)
    mean = s1 * inv_b
    var = s2 * inv_b - mean * mean  # biased, like torch train-mode BN
    scale = gamma * jax.lax.rsqrt(var + BN_EPS)
    shift = beta - mean * scale
    return z * scale + shift


def _leaky(z):
    return jnp.maximum(z, LEAKY_SLOPE * z)


def _wave_resnet_kernel(*refs, planes):
    """Entire forward pass, Python-unrolled over layers.  refs = (x, params..., out)."""
    x_ref, out_ref = refs[0], refs[-1]
    it = iter(refs[1:-1])

    inv_b = 1.0 / x_ref.shape[0]
    x = x_ref[...].astype(jnp.float32)

    for stage_planes in planes:
        # Fused down_sample + first block: one (B, Fin) @ (Fin, 2*Fout) matmul.
        fw = next(it)[...]
        fgamma = next(it)[...]
        fbeta = next(it)[...]
        z = jnp.dot(x.astype(fw.dtype), fw, preferred_element_type=jnp.float32)
        z = _bn_affine(z, fgamma, fbeta, inv_b)
        fp = fw.shape[1] // 2                 # static, lane-aligned (multiple of 128)
        identity = z[:, :fp]                  # down_sample: Linear + BN (no activation)
        h = _leaky(z[:, fp:])                 # first block: Linear + BN + LeakyReLU

        # Remaining blocks of this stage.
        for _ in range(stage_planes - 1):
            w = next(it)[...]
            gamma = next(it)[...]
            beta = next(it)[...]
            h2 = jnp.dot(h.astype(w.dtype), w, preferred_element_type=jnp.float32)
            h = _leaky(_bn_affine(h2, gamma, beta, inv_b))

        # residual add AFTER the layer output (matches reference forward_impl).
        x = h + identity

    # Final head: plain Linear with bias (no BN, no activation).
    wf = next(it)[...]
    bf = next(it)[...]
    z = jnp.dot(x.astype(wf.dtype), wf, preferred_element_type=jnp.float32) + bf
    out_ref[...] = z.astype(out_ref.dtype)


# ----------------------------------------------------------------------------
# Wrapper: one pallas_call for the whole network.
# ----------------------------------------------------------------------------
def wave_resnet_forward(params, x, *, out_nodes):
    B = x.shape[0]
    planes = tuple(len(blocks) for blocks in params["layers"])
    k_pad = params["down"][0]["w"].shape[0]
    n_out_pad = params["fin"]["w"].shape[1]

    # Flatten params in the exact order the kernel consumes them, fusing each
    # stage's down_sample with its first block along the output-feature axis.
    flat = []
    flops = 0
    transcendentals = 0
    for stage in range(len(planes)):
        down = params["down"][stage]
        blocks = list(params["layers"][stage])
        first = blocks[0]
        fw = jnp.concatenate([down["w"], first["w"]], axis=1)
        fgamma = jnp.concatenate([down["gamma"], first["gamma"]], axis=1)
        fbeta = jnp.concatenate([down["beta"], first["beta"]], axis=1)
        flat += [fw, fgamma, fbeta]
        flops += 2 * B * fw.shape[0] * fw.shape[1]
        transcendentals += fw.shape[1]  # one rsqrt per feature per BN layer
        for p in blocks[1:]:
            flat += [p["w"], p["gamma"], p["beta"]]
            flops += 2 * B * p["w"].shape[0] * p["w"].shape[1]
            transcendentals += p["w"].shape[1]
    flat += [params["fin"]["w"], params["fin"]["b"]]
    flops += 2 * B * params["fin"]["w"].shape[0] * n_out_pad

    # Lane-dense zero-padded input (pad columns stay exactly 0 end-to-end).
    x_p = jnp.pad(x.astype(jnp.float32), ((0, 0), (0, k_pad - x.shape[1])))

    operands = [x_p] + flat
    bytes_accessed = sum(int(a.size) * a.dtype.itemsize for a in operands) + B * n_out_pad * 4

    vmem = pl.BlockSpec(memory_space=pltpu.MemorySpace.VMEM)
    out_p = pl.pallas_call(
        functools.partial(_wave_resnet_kernel, planes=planes),
        out_shape=jax.ShapeDtypeStruct((B, n_out_pad), jnp.float32),
        in_specs=[vmem] * len(operands),
        out_specs=vmem,
        compiler_params=pltpu.CompilerParams(
            # headroom over the 16/32 MiB default scoped limits; capped below v7x's
            # 64 MiB physical VMEM.
            vmem_limit_bytes=int(min(64 << 20, max(32 << 20, 4 * bytes_accessed))),
        ),
        cost_estimate=pl.CostEstimate(
            flops=int(flops),
            transcendentals=int(transcendentals),
            bytes_accessed=int(bytes_accessed),
        ),
    )(*operands)
    return out_p[:, :out_nodes]


# ----------------------------------------------------------------------------
# Parameter construction (deterministic, kaiming-normal like the PyTorch init),
# stored transposed (in, out) and zero-padded to 128-multiples.
# ----------------------------------------------------------------------------
def _kaiming_weight(key, fan_in, fan_out, fan_in_pad, fan_out_pad, dtype):
    gain = (2.0 / (1.0 + LEAKY_SLOPE ** 2)) ** 0.5  # leaky_relu gain
    std = gain / (fan_out ** 0.5)                   # mode='fan_out'
    w = std * jax.random.normal(key, (fan_in, fan_out), jnp.float32)
    return jnp.zeros((fan_in_pad, fan_out_pad), dtype).at[:fan_in, :fan_out].set(w.astype(dtype))


def _bn_params(n, n_pad):
    gamma = jnp.zeros((1, n_pad), jnp.float32).at[0, :n].set(1.0)  # pad cols multiply exact zeros
    beta = jnp.zeros((1, n_pad), jnp.float32)                      # pad cols must stay 0
    return gamma, beta


def init_wave_resnet(key, in_nodes, nodes, planes, out_nodes, weight_dtype=jnp.bfloat16):
    """Mirrors WaveResNET.__init__.  Linear biases of BN layers are omitted (dead
    under train-mode BatchNorm); the final head keeps its bias.  bf16 weights are
    the default (matmuls accumulate f32); pass weight_dtype=jnp.float32 for exact
    parity with the f32 PyTorch reference."""
    params = {"down": [], "layers": []}
    cur, cur_p = in_nodes, _round_up(in_nodes)
    for stage in range(3):
        n, n_p = nodes[stage], _round_up(nodes[stage])

        key, k = jax.random.split(key)
        gamma, beta = _bn_params(n, n_p)
        params["down"].append(
            dict(w=_kaiming_weight(k, cur, n, cur_p, n_p, weight_dtype), gamma=gamma, beta=beta)
        )

        blocks = []
        b_in, b_in_p = cur, cur_p
        for _ in range(planes[stage]):
            key, k = jax.random.split(key)
            gamma, beta = _bn_params(n, n_p)
            blocks.append(
                dict(w=_kaiming_weight(k, b_in, n, b_in_p, n_p, weight_dtype),
                     gamma=gamma, beta=beta)
            )
            b_in, b_in_p = n, n_p
        params["layers"].append(blocks)
        cur, cur_p = n, n_p

    key, kw, kb = jax.random.split(key, 3)
    n_out_p = _round_up(out_nodes)
    wf = _kaiming_weight(kw, cur, out_nodes, cur_p, n_out_p, weight_dtype)
    bound = 1.0 / (cur ** 0.5)
    bf = jax.random.uniform(kb, (out_nodes,), jnp.float32, -bound, bound)
    bf = jnp.zeros((1, n_out_p), jnp.float32).at[0, :out_nodes].set(bf)
    params["fin"] = dict(w=wf, b=bf)
    return params


if __name__ == "__main__":
    # B=128 fills the MXU sublane rows; at B=8 the kernel is pure launch/drain latency.
    # (BN uses batch statistics, so B is a train-mode semantic choice as well.)
    B = 128
    IN_NODES = 32
    NODES = (32, 32, 32)
    PLANES = (2, 2, 2)
    OUT_NODES = 5

    key = jax.random.PRNGKey(0)
    kx, kp = jax.random.split(key)
    x = jax.random.normal(kx, (B, IN_NODES), jnp.float32)
    # bf16 weights by default (f32 accumulation); use weight_dtype=jnp.float32 for
    # bit-parity checks against the PyTorch reference.
    params = init_wave_resnet(kp, IN_NODES, NODES, PLANES, OUT_NODES,
                              weight_dtype=jnp.bfloat16)

    fwd = jax.jit(functools.partial(wave_resnet_forward, out_nodes=OUT_NODES))
    out = fwd(params, x)
    jax.block_until_ready(out)
    assert out.shape == (B, OUT_NODES)
    assert bool(jnp.all(jnp.isfinite(out)))
    print("KERNEL_OK")
</pallas_src>

<mosaic_0001>
module attributes {stable_mosaic.version = 11 : i64} {
  func.func @_wave_resnet_kernel(%arg0: memref<128x128xf32, #tpu.memory_space<vmem>>, %arg1: memref<128x256xbf16, #tpu.memory_space<vmem>>, %arg2: memref<1x256xf32, #tpu.memory_space<vmem>>, %arg3: memref<1x256xf32, #tpu.memory_space<vmem>>, %arg4: memref<128x128xbf16, #tpu.memory_space<vmem>>, %arg5: memref<1x128xf32, #tpu.memory_space<vmem>>, %arg6: memref<1x128xf32, #tpu.memory_space<vmem>>, %arg7: memref<128x256xbf16, #tpu.memory_space<vmem>>, %arg8: memref<1x256xf32, #tpu.memory_space<vmem>>, %arg9: memref<1x256xf32, #tpu.memory_space<vmem>>, %arg10: memref<128x128xbf16, #tpu.memory_space<vmem>>, %arg11: memref<1x128xf32, #tpu.memory_space<vmem>>, %arg12: memref<1x128xf32, #tpu.memory_space<vmem>>, %arg13: memref<128x256xbf16, #tpu.memory_space<vmem>>, %arg14: memref<1x256xf32, #tpu.memory_space<vmem>>, %arg15: memref<1x256xf32, #tpu.memory_space<vmem>>, %arg16: memref<128x128xbf16, #tpu.memory_space<vmem>>, %arg17: memref<1x128xf32, #tpu.memory_space<vmem>>, %arg18: memref<1x128xf32, #tpu.memory_space<vmem>>, %arg19: memref<128x128xbf16, #tpu.memory_space<vmem>>, %arg20: memref<1x128xf32, #tpu.memory_space<vmem>>, %arg21: memref<128x128xf32, #tpu.memory_space<vmem>>) attributes {dimension_semantics = [], scalar_prefetch = 0 : i64, scratch_operands = 0 : i64, tpu.core_type = #tpu.core_type<tc>} {
    %c0 = arith.constant 0 : index
    %c0_0 = arith.constant 0 : index
    %0 = vector.load %arg0[%c0, %c0_0] : memref<128x128xf32, #tpu.memory_space<vmem>>, vector<128x128xf32>
    %c0_1 = arith.constant 0 : index
    %c0_2 = arith.constant 0 : index
    %1 = vector.load %arg1[%c0_1, %c0_2] : memref<128x256xbf16, #tpu.memory_space<vmem>>, vector<128x256xbf16>
    %c0_3 = arith.constant 0 : index
    %c0_4 = arith.constant 0 : index
    %2 = vector.load %arg2[%c0_3, %c0_4] : memref<1x256xf32, #tpu.memory_space<vmem>>, vector<1x256xf32>
    %c0_5 = arith.constant 0 : index
    %c0_6 = arith.constant 0 : index
    %3 = vector.load %arg3[%c0_5, %c0_6] : memref<1x256xf32, #tpu.memory_space<vmem>>, vector<1x256xf32>
    %4 = arith.truncf %0 : vector<128x128xf32> to vector<128x128xbf16>
    %cst = arith.constant dense<0.000000e+00> : vector<128x256xf32>
    %5 = tpu.matmul %4, %1, %cst {dimension_numbers = #tpu.dot_dimension_numbers<[1], [0], [0], [1], [0, 0, 1, 1], [], []>} : vector<128x128xbf16>, vector<128x256xbf16>, vector<128x256xf32> -> vector<128x256xf32>
    %cst_7 = arith.constant dense<0.000000e+00> : vector<256xf32>
    %6 = vector.multi_reduction <add>, %5, %cst_7 [0] : vector<128x256xf32> to vector<256xf32>
    %7 = vector.shape_cast %6 : vector<256xf32> to vector<1x256xf32>
    %8 = arith.mulf %5, %5 : vector<128x256xf32>
    %cst_8 = arith.constant dense<0.000000e+00> : vector<256xf32>
    %9 = vector.multi_reduction <add>, %8, %cst_8 [0] : vector<128x256xf32> to vector<256xf32>
    %10 = vector.shape_cast %9 : vector<256xf32> to vector<1x256xf32>
    %cst_9 = arith.constant 7.812500e-03 : f32
    %11 = vector.broadcast %cst_9 : f32 to vector<1x256xf32>
    %12 = arith.mulf %7, %11 : vector<1x256xf32>
    %cst_10 = arith.constant 7.812500e-03 : f32
    %13 = vector.broadcast %cst_10 : f32 to vector<1x256xf32>
    %14 = arith.mulf %10, %13 : vector<1x256xf32>
    %15 = arith.mulf %12, %12 : vector<1x256xf32>
    %16 = arith.subf %14, %15 : vector<1x256xf32>
    %cst_11 = arith.constant 9.99999974E-6 : f32
    %17 = vector.broadcast %cst_11 : f32 to vector<1x256xf32>
    %18 = arith.addf %16, %17 : vector<1x256xf32>
    %19 = math.rsqrt %18 : vector<1x256xf32>
    %20 = arith.mulf %2, %19 : vector<1x256xf32>
    %21 = arith.mulf %12, %20 : vector<1x256xf32>
    %22 = arith.subf %3, %21 : vector<1x256xf32>
    %23 = vector.broadcast %20 : vector<1x256xf32> to vector<128x256xf32>
    %24 = arith.mulf %5, %23 : vector<128x256xf32>
    %25 = vector.broadcast %22 : vector<1x256xf32> to vector<128x256xf32>
    %26 = arith.addf %24, %25 : vector<128x256xf32>
    %27 = vector.extract_strided_slice %26 {offsets = [0, 0], sizes = [128, 128], strides = [1, 1]} : vector<128x256xf32> to vector<128x128xf32>
    %28 = vector.extract_strided_slice %26 {offsets = [0, 128], sizes = [128, 128], strides = [1, 1]} : vector<128x256xf32> to vector<128x128xf32>
    %cst_12 = arith.constant 0.00999999977 : f32
    %29 = vector.broadcast %cst_12 : f32 to vector<128x128xf32>
    %30 = arith.mulf %29, %28 : vector<128x128xf32>
    %31 = arith.maximumf %28, %30 : vector<128x128xf32>
    %c0_13 = arith.constant 0 : index
    %c0_14 = arith.constant 0 : index
    %32 = vector.load %arg4[%c0_13, %c0_14] : memref<128x128xbf16, #tpu.memory_space<vmem>>, vector<128x128xbf16>
    %c0_15 = arith.constant 0 : index
    %c0_16 = arith.constant 0 : index
    %33 = vector.load %arg5[%c0_15, %c0_16] : memref<1x128xf32, #tpu.memory_space<vmem>>, vector<1x128xf32>
    %c0_17 = arith.constant 0 : index
    %c0_18 = arith.constant 0 : index
    %34 = vector.load %arg6[%c0_17, %c0_18] : memref<1x128xf32, #tpu.memory_space<vmem>>, vector<1x128xf32>
    %35 = arith.truncf %31 : vector<128x128xf32> to vector<128x128xbf16>
    %cst_19 = arith.constant dense<0.000000e+00> : vector<128x128xf32>
    %36 = tpu.matmul %35, %32, %cst_19 {dimension_numbers = #tpu.dot_dimension_numbers<[1], [0], [0], [1], [0, 0, 1, 1], [], []>} : vector<128x128xbf16>, vector<128x128xbf16>, vector<128x128xf32> -> vector<128x128xf32>
    %cst_20 = arith.constant dense<0.000000e+00> : vector<128xf32>
    %37 = vector.multi_reduction <add>, %36, %cst_20 [0] : vector<128x128xf32> to vector<128xf32>
    %38 = vector.shape_cast %37 : vector<128xf32> to vector<1x128xf32>
    %39 = arith.mulf %36, %36 : vector<128x128xf32>
    %cst_21 = arith.constant dense<0.000000e+00> : vector<128xf32>
    %40 = vector.multi_reduction <add>, %39, %cst_21 [0] : vector<128x128xf32> to vector<128xf32>
    %41 = vector.shape_cast %40 : vector<128xf32> to vector<1x128xf32>
    %cst_22 = arith.constant 7.812500e-03 : f32
    %42 = vector.broadcast %cst_22 : f32 to vector<1x128xf32>
    %43 = arith.mulf %38, %42 : vector<1x128xf32>
    %cst_23 = arith.constant 7.812500e-03 : f32
    %44 = vector.broadcast %cst_23 : f32 to vector<1x128xf32>
    %45 = arith.mulf %41, %44 : vector<1x128xf32>
    %46 = arith.mulf %43, %43 : vector<1x128xf32>
    %47 = arith.subf %45, %46 : vector<1x128xf32>
    %cst_24 = arith.constant 9.99999974E-6 : f32
    %48 = vector.broadcast %cst_24 : f32 to vector<1x128xf32>
    %49 = arith.addf %47, %48 : vector<1x128xf32>
    %50 = math.rsqrt %49 : vector<1x128xf32>
    %51 = arith.mulf %33, %50 : vector<1x128xf32>
    %52 = arith.mulf %43, %51 : vector<1x128xf32>
    %53 = arith.subf %34, %52 : vector<1x128xf32>
    %54 = vector.broadcast %51 : vector<1x128xf32> to vector<128x128xf32>
    %55 = arith.mulf %36, %54 : vector<128x128xf32>
    %56 = vector.broadcast %53 : vector<1x128xf32> to vector<128x128xf32>
    %57 = arith.addf %55, %56 : vector<128x128xf32>
    %cst_25 = arith.constant 0.00999999977 : f32
    %58 = vector.broadcast %cst_25 : f32 to vector<128x128xf32>
    %59 = arith.mulf %58, %57 : vector<128x128xf32>
    %60 = arith.maximumf %57, %59 : vector<128x128xf32>
    %61 = arith.addf %60, %27 : vector<128x128xf32>
    %c0_26 = arith.constant 0 : index
    %c0_27 = arith.constant 0 : index
    %62 = vector.load %arg7[%c0_26, %c0_27] : memref<128x256xbf16, #tpu.memory_space<vmem>>, vector<128x256xbf16>
    %c0_28 = arith.constant 0 : index
    %c0_29 = arith.constant 0 : index
    %63 = vector.load %arg8[%c0_28, %c0_29] : memref<1x256xf32, #tpu.memory_space<vmem>>, vector<1x256xf32>
    %c0_30 = arith.constant 0 : index
    %c0_31 = arith.constant 0 : index
    %64 = vector.load %arg9[%c0_30, %c0_31] : memref<1x256xf32, #tpu.memory_space<vmem>>, vector<1x256xf32>
    %65 = arith.truncf %61 : vector<128x128xf32> to vector<128x128xbf16>
    %cst_32 = arith.constant dense<0.000000e+00> : vector<128x256xf32>
    %66 = tpu.matmul %65, %62, %cst_32 {dimension_numbers = #tpu.dot_dimension_numbers<[1], [0], [0], [1], [0, 0, 1, 1], [], []>} : vector<128x128xbf16>, vector<128x256xbf16>, vector<128x256xf32> -> vector<128x256xf32>
    %cst_33 = arith.constant dense<0.000000e+00> : vector<256xf32>
    %67 = vector.multi_reduction <add>, %66, %cst_33 [0] : vector<128x256xf32> to vector<256xf32>
    %68 = vector.shape_cast %67 : vector<256xf32> to vector<1x256xf32>
    %69 = arith.mulf %66, %66 : vector<128x256xf32>
    %cst_34 = arith.constant dense<0.000000e+00> : vector<256xf32>
    %70 = vector.multi_reduction <add>, %69, %cst_34 [0] : vector<128x256xf32> to vector<256xf32>
    %71 = vector.shape_cast %70 : vector<256xf32> to vector<1x256xf32>
    %cst_35 = arith.constant 7.812500e-03 : f32
    %72 = vector.broadcast %cst_35 : f32 to vector<1x256xf32>
    %73 = arith.mulf %68, %72 : vector<1x256xf32>
    %cst_36 = arith.constant 7.812500e-03 : f32
    %74 = vector.broadcast %cst_36 : f32 to vector<1x256xf32>
    %75 = arith.mulf %71, %74 : vector<1x256xf32>
    %76 = arith.mulf %73, %73 : vector<1x256xf32>
    %77 = arith.subf %75, %76 : vector<1x256xf32>
    %cst_37 = arith.constant 9.99999974E-6 : f32
    %78 = vector.broadcast %cst_37 : f32 to vector<1x256xf32>
    %79 = arith.addf %77, %78 : vector<1x256xf32>
    %80 = math.rsqrt %79 : vector<1x256xf32>
    %81 = arith.mulf %63, %80 : vector<1x256xf32>
    %82 = arith.mulf %73, %81 : vector<1x256xf32>
    %83 = arith.subf %64, %82 : vector<1x256xf32>
    %84 = vector.broadcast %81 : vector<1x256xf32> to vector<128x256xf32>
    %85 = arith.mulf %66, %84 : vector<128x256xf32>
    %86 = vector.broadcast %83 : vector<1x256xf32> to vector<128x256xf32>
    %87 = arith.addf %85, %86 : vector<128x256xf32>
    %88 = vector.extract_strided_slice %87 {offsets = [0, 0], sizes = [128, 128], strides = [1, 1]} : vector<128x256xf32> to vector<128x128xf32>
    %89 = vector.extract_strided_slice %87 {offsets = [0, 128], sizes = [128, 128], strides = [1, 1]} : vector<128x256xf32> to vector<128x128xf32>
    %cst_38 = arith.constant 0.00999999977 : f32
    %90 = vector.broadcast %cst_38 : f32 to vector<128x128xf32>
    %91 = arith.mulf %90, %89 : vector<128x128xf32>
    %92 = arith.maximumf %89, %91 : vector<128x128xf32>
    %c0_39 = arith.constant 0 : index
    %c0_40 = arith.constant 0 : index
    %93 = vector.load %arg10[%c0_39, %c0_40] : memref<128x128xbf16, #tpu.memory_space<vmem>>, vector<128x128xbf16>
    %c0_41 = arith.constant 0 : index
    %c0_42 = arith.constant 0 : index
    %94 = vector.load %arg11[%c0_41, %c0_42] : memref<1x128xf32, #tpu.memory_space<vmem>>, vector<1x128xf32>
    %c0_43 = arith.constant 0 : index
    %c0_44 = arith.constant 0 : index
    %95 = vector.load %arg12[%c0_43, %c0_44] : memref<1x128xf32, #tpu.memory_space<vmem>>, vector<1x128xf32>
    %96 = arith.truncf %92 : vector<128x128xf32> to vector<128x128xbf16>
    %cst_45 = arith.constant dense<0.000000e+00> : vector<128x128xf32>
    %97 = tpu.matmul %96, %93, %cst_45 {dimension_numbers = #tpu.dot_dimension_numbers<[1], [0], [0], [1], [0, 0, 1, 1], [], []>} : vector<128x128xbf16>, vector<128x128xbf16>, vector<128x128xf32> -> vector<128x128xf32>
    %cst_46 = arith.constant dense<0.000000e+00> : vector<128xf32>
    %98 = vector.multi_reduction <add>, %97, %cst_46 [0] : vector<128x128xf32> to vector<128xf32>
    %99 = vector.shape_cast %98 : vector<128xf32> to vector<1x128xf32>
    %100 = arith.mulf %97, %97 : vector<128x128xf32>
    %cst_47 = arith.constant dense<0.000000e+00> : vector<128xf32>
    %101 = vector.multi_reduction <add>, %100, %cst_47 [0] : vector<128x128xf32> to vector<128xf32>
    %102 = vector.shape_cast %101 : vector<128xf32> to vector<1x128xf32>
    %cst_48 = arith.constant 7.812500e-03 : f32
    %103 = vector.broadcast %cst_48 : f32 to vector<1x128xf32>
    %104 = arith.mulf %99, %103 : vector<1x128xf32>
    %cst_49 = arith.constant 7.812500e-03 : f32
    %105 = vector.broadcast %cst_49 : f32 to vector<1x128xf32>
    %106 = arith.mulf %102, %105 : vector<1x128xf32>
    %107 = arith.mulf %104, %104 : vector<1x128xf32>
    %108 = arith.subf %106, %107 : vector<1x128xf32>
    %cst_50 = arith.constant 9.99999974E-6 : f32
    %109 = vector.broadcast %cst_50 : f32 to vector<1x128xf32>
    %110 = arith.addf %108, %109 : vector<1x128xf32>
    %111 = math.rsqrt %110 : vector<1x128xf32>
    %112 = arith.mulf %94, %111 : vector<1x128xf32>
    %113 = arith.mulf %104, %112 : vector<1x128xf32>
    %114 = arith.subf %95, %113 : vector<1x128xf32>
    %115 = vector.broadcast %112 : vector<1x128xf32> to vector<128x128xf32>
    %116 = arith.mulf %97, %115 : vector<128x128xf32>
    %117 = vector.broadcast %114 : vector<1x128xf32> to vector<128x128xf32>
    %118 = arith.addf %116, %117 : vector<128x128xf32>
    %cst_51 = arith.constant 0.00999999977 : f32
    %119 = vector.broadcast %cst_51 : f32 to vector<128x128xf32>
    %120 = arith.mulf %119, %118 : vector<128x128xf32>
    %121 = arith.maximumf %118, %120 : vector<128x128xf32>
    %122 = arith.addf %121, %88 : vector<128x128xf32>
    %c0_52 = arith.constant 0 : index
    %c0_53 = arith.constant 0 : index
    %123 = vector.load %arg13[%c0_52, %c0_53] : memref<128x256xbf16, #tpu.memory_space<vmem>>, vector<128x256xbf16>
    %c0_54 = arith.constant 0 : index
    %c0_55 = arith.constant 0 : index
    %124 = vector.load %arg14[%c0_54, %c0_55] : memref<1x256xf32, #tpu.memory_space<vmem>>, vector<1x256xf32>
    %c0_56 = arith.constant 0 : index
    %c0_57 = arith.constant 0 : index
    %125 = vector.load %arg15[%c0_56, %c0_57] : memref<1x256xf32, #tpu.memory_space<vmem>>, vector<1x256xf32>
    %126 = arith.truncf %122 : vector<128x128xf32> to vector<128x128xbf16>
    %cst_58 = arith.constant dense<0.000000e+00> : vector<128x256xf32>
    %127 = tpu.matmul %126, %123, %cst_58 {dimension_numbers = #tpu.dot_dimension_numbers<[1], [0], [0], [1], [0, 0, 1, 1], [], []>} : vector<128x128xbf16>, vector<128x256xbf16>, vector<128x256xf32> -> vector<128x256xf32>
    %cst_59 = arith.constant dense<0.000000e+00> : vector<256xf32>
    %128 = vector.multi_reduction <add>, %127, %cst_59 [0] : vector<128x256xf32> to vector<256xf32>
    %129 = vector.shape_cast %128 : vector<256xf32> to vector<1x256xf32>
    %130 = arith.mulf %127, %127 : vector<128x256xf32>
    %cst_60 = arith.constant dense<0.000000e+00> : vector<256xf32>
    %131 = vector.multi_reduction <add>, %130, %cst_60 [0] : vector<128x256xf32> to vector<256xf32>
    %132 = vector.shape_cast %131 : vector<256xf32> to vector<1x256xf32>
    %cst_61 = arith.constant 7.812500e-03 : f32
    %133 = vector.broadcast %cst_61 : f32 to vector<1x256xf32>
    %134 = arith.mulf %129, %133 : vector<1x256xf32>
    %cst_62 = arith.constant 7.812500e-03 : f32
    %135 = vector.broadcast %cst_62 : f32 to vector<1x256xf32>
    %136 = arith.mulf %132, %135 : vector<1x256xf32>
    %137 = arith.mulf %134, %134 : vector<1x256xf32>
    %138 = arith.subf %136, %137 : vector<1x256xf32>
    %cst_63 = arith.constant 9.99999974E-6 : f32
    %139 = vector.broadcast %cst_63 : f32 to vector<1x256xf32>
    %140 = arith.addf %138, %139 : vector<1x256xf32>
    %141 = math.rsqrt %140 : vector<1x256xf32>
    %142 = arith.mulf %124, %141 : vector<1x256xf32>
    %143 = arith.mulf %134, %142 : vector<1x256xf32>
    %144 = arith.subf %125, %143 : vector<1x256xf32>
    %145 = vector.broadcast %142 : vector<1x256xf32> to vector<128x256xf32>
    %146 = arith.mulf %127, %145 : vector<128x256xf32>
    %147 = vector.broadcast %144 : vector<1x256xf32> to vector<128x256xf32>
    %148 = arith.addf %146, %147 : vector<128x256xf32>
    %149 = vector.extract_strided_slice %148 {offsets = [0, 0], sizes = [128, 128], strides = [1, 1]} : vector<128x256xf32> to vector<128x128xf32>
    %150 = vector.extract_strided_slice %148 {offsets = [0, 128], sizes = [128, 128], strides = [1, 1]} : vector<128x256xf32> to vector<128x128xf32>
    %cst_64 = arith.constant 0.00999999977 : f32
    %151 = vector.broadcast %cst_64 : f32 to vector<128x128xf32>
    %152 = arith.mulf %151, %150 : vector<128x128xf32>
    %153 = arith.maximumf %150, %152 : vector<128x128xf32>
    %c0_65 = arith.constant 0 : index
    %c0_66 = arith.constant 0 : index
    %154 = vector.load %arg16[%c0_65, %c0_66] : memref<128x128xbf16, #tpu.memory_space<vmem>>, vector<128x128xbf16>
    %c0_67 = arith.constant 0 : index
    %c0_68 = arith.constant 0 : index
    %155 = vector.load %arg17[%c0_67, %c0_68] : memref<1x128xf32, #tpu.memory_space<vmem>>, vector<1x128xf32>
    %c0_69 = arith.constant 0 : index
    %c0_70 = arith.constant 0 : index
    %156 = vector.load %arg18[%c0_69, %c0_70] : memref<1x128xf32, #tpu.memory_space<vmem>>, vector<1x128xf32>
    %157 = arith.truncf %153 : vector<128x128xf32> to vector<128x128xbf16>
    %cst_71 = arith.constant dense<0.000000e+00> : vector<128x128xf32>
    %158 = tpu.matmul %157, %154, %cst_71 {dimension_numbers = #tpu.dot_dimension_numbers<[1], [0], [0], [1], [0, 0, 1, 1], [], []>} : vector<128x128xbf16>, vector<128x128xbf16>, vector<128x128xf32> -> vector<128x128xf32>
    %cst_72 = arith.constant dense<0.000000e+00> : vector<128xf32>
    %159 = vector.multi_reduction <add>, %158, %cst_72 [0] : vector<128x128xf32> to vector<128xf32>
    %160 = vector.shape_cast %159 : vector<128xf32> to vector<1x128xf32>
    %161 = arith.mulf %158, %158 : vector<128x128xf32>
    %cst_73 = arith.constant dense<0.000000e+00> : vector<128xf32>
    %162 = vector.multi_reduction <add>, %161, %cst_73 [0] : vector<128x128xf32> to vector<128xf32>
    %163 = vector.shape_cast %162 : vector<128xf32> to vector<1x128xf32>
    %cst_74 = arith.constant 7.812500e-03 : f32
    %164 = vector.broadcast %cst_74 : f32 to vector<1x128xf32>
    %165 = arith.mulf %160, %164 : vector<1x128xf32>
    %cst_75 = arith.constant 7.812500e-03 : f32
    %166 = vector.broadcast %cst_75 : f32 to vector<1x128xf32>
    %167 = arith.mulf %163, %166 : vector<1x128xf32>
    %168 = arith.mulf %165, %165 : vector<1x128xf32>
    %169 = arith.subf %167, %168 : vector<1x128xf32>
    %cst_76 = arith.constant 9.99999974E-6 : f32
    %170 = vector.broadcast %cst_76 : f32 to vector<1x128xf32>
    %171 = arith.addf %169, %170 : vector<1x128xf32>
    %172 = math.rsqrt %171 : vector<1x128xf32>
    %173 = arith.mulf %155, %172 : vector<1x128xf32>
    %174 = arith.mulf %165, %173 : vector<1x128xf32>
    %175 = arith.subf %156, %174 : vector<1x128xf32>
    %176 = vector.broadcast %173 : vector<1x128xf32> to vector<128x128xf32>
    %177 = arith.mulf %158, %176 : vector<128x128xf32>
    %178 = vector.broadcast %175 : vector<1x128xf32> to vector<128x128xf32>
    %179 = arith.addf %177, %178 : vector<128x128xf32>
    %cst_77 = arith.constant 0.00999999977 : f32
    %180 = vector.broadcast %cst_77 : f32 to vector<128x128xf32>
    %181 = arith.mulf %180, %179 : vector<128x128xf32>
    %182 = arith.maximumf %179, %181 : vector<128x128xf32>
    %183 = arith.addf %182, %149 : vector<128x128xf32>
    %c0_78 = arith.constant 0 : index
    %c0_79 = arith.constant 0 : index
    %184 = vector.load %arg19[%c0_78, %c0_79] : memref<128x128xbf16, #tpu.memory_space<vmem>>, vector<128x128xbf16>
    %c0_80 = arith.constant 0 : index
    %c0_81 = arith.constant 0 : index
    %185 = vector.load %arg20[%c0_80, %c0_81] : memref<1x128xf32, #tpu.memory_space<vmem>>, vector<1x128xf32>
    %186 = arith.truncf %183 : vector<128x128xf32> to vector<128x128xbf16>
    %cst_82 = arith.constant dense<0.000000e+00> : vector<128x128xf32>
    %187 = tpu.matmul %186, %184, %cst_82 {dimension_numbers = #tpu.dot_dimension_numbers<[1], [0], [0], [1], [0, 0, 1, 1], [], []>} : vector<128x128xbf16>, vector<128x128xbf16>, vector<128x128xf32> -> vector<128x128xf32>
    %188 = vector.broadcast %185 : vector<1x128xf32> to vector<128x128xf32>
    %189 = arith.addf %187, %188 : vector<128x128xf32>
    %c0_83 = arith.constant 0 : index
    %c0_84 = arith.constant 0 : index
    %190 = vector.load %arg21[%c0_83, %c0_84] : memref<128x128xf32, #tpu.memory_space<vmem>>, vector<128x128xf32>
    tpu.vector_store %arg21[%c0_83, %c0_84], %189 {strides = array<i32>} : memref<128x128xf32, #tpu.memory_space<vmem>>, vector<128x128xf32>,
    return
  }
}

</mosaic_0001>

<bundles_post_ra>
// kernel: wave_resnet_forward.1
= control target key start
LH: loop header
LB: loop body
LE: loop exit
PB: predicated region body
PF: predicated region fallthrough
CT: control target
= control target key end

     0   :  { %v3183_v1 = vmov 0   ;;  %s5023_s1 = inlined_call_operand.vmem [shape: bf16[128,256], index: 1, kind: input, shape index: {}]   ;;  %s5024_s0 = inlined_call_operand.vmem [shape: f32[128,128], index: 0, kind: input, shape index: {}]   ;;  %s5025_s4 = inlined_call_operand.vmem [shape: bf16[128,128], index: 4, kind: input, shape index: {}]   ;;  %s5026_s2 = inlined_call_operand.vmem [shape: f32[1,256], index: 2, kind: input, shape index: {}]   ;;  %s5027_s3 = inlined_call_operand.vmem [shape: f32[1,256], index: 3, kind: input, shape index: {}]   ;;  %s5028_s7 = inlined_call_operand.vmem [shape: bf16[128,256], index: 7, kind: input, shape index: {}]   ;;  %s5029_s5 = inlined_call_operand.vmem [shape: f32[1,128], index: 5, kind: input, shape index: {}]   ;;  %s5030_s6 = inlined_call_operand.vmem [shape: f32[1,128], index: 6, kind: input, shape index: {}]   ;;  %s5031_s10 = inlined_call_operand.vmem [shape: bf16[128,128], index: 10, kind: input, shape index: {}]   ;;  %s5032_s8 = inlined_call_operand.vmem [shape: f32[1,256], index: 8, kind: input, shape index: {}]   ;;  %s5033_s9 = inlined_call_operand.vmem [shape: f32[1,256], index: 9, kind: input, shape index: {}]   ;;  %s5034_s13 = inlined_call_operand.vmem [shape: bf16[128,256], index: 13, kind: input, shape index: {}]   ;;  %s5035_s11 = inlined_call_operand.vmem [shape: f32[1,128], index: 11, kind: input, shape index: {}]   ;;  %s5036_s12 = inlined_call_operand.vmem [shape: f32[1,128], index: 12, kind: input, shape index: {}]   ;;  %s5037_s16 = inlined_call_operand.vmem [shape: bf16[128,128], index: 16, kind: input, shape index: {}]   ;;  %s5038_s14 = inlined_call_operand.vmem [shape: f32[1,256], index: 14, kind: input, shape index: {}]   ;;  %s5039_s15 = inlined_call_operand.vmem [shape: f32[1,256], index: 15, kind: input, shape index: {}]   ;;  %s5040_s19 = inlined_call_operand.vmem [shape: bf16[128,128], index: 19, kind: input, shape index: {}]   ;;  %s5041_s17 = inlined_call_operand.vmem [shape: f32[1,128], index: 17, kind: input, shape index: {}]   ;;  %s5042_s18 = inlined_call_operand.vmem [shape: f32[1,128], index: 18, kind: input, shape index: {}]   ;;  %s5043_s20 = inlined_call_operand.vmem [shape: f32[1,128], index: 20, kind: input, shape index: {}]   ;;  %s5044_s21 = inlined_call_operand.vmem [shape: f32[128,128], index: 21, kind: output, shape index: {}]  }
   0x1   :  { %5049 = sst [smem:[#allocation2_spill]] %s5023_s1  ;;  %223 = vmatprep.mubr.bf16.mxu0 %v3183_v1 }
   0x2   :  { %5050 = sst [smem:[#allocation3_spill]] %s5024_s0  ;;  %s5055_s26 = sld [smem:[#allocation2_spill]] }
   0x3   :  { %5051 = sst [smem:[#allocation4_spill]] %s5025_s4  ;;  %s5056_s1 = sld [smem:[#allocation3_spill]] }
   0x4   :  { %5052 = sst [smem:[#allocation5_spill]] %s5026_s2  ;;  %s5057_s23 = sld [smem:[#allocation4_spill]] }
   0x5   :  { %5053 = sst [smem:[#allocation6_spill]] %s5027_s3  ;;  %s5058_s0 = sld [smem:[#allocation5_spill]] }
   0x6   :  { %5054 = sst [smem:[#allocation7_spill]] %s5028_s7 }
   0x7   :  { %s5060_s2 = sld [smem:[#allocation7_spill]] }
   0x8   :  { %v3061_v0 = vld [vmem:[%s5055_s26 + $0x4] ss:$8 sps:$4 sm:$0xff]   ;;  %v3063_v2 = vld [vmem:[%s5055_s26] ss:$8 sps:$4 sm:$0xff]   ;;  %v3064_v3 = vld [vmem:[%s5055_s26 + $0x14] ss:$8 sps:$4 sm:$0xff]  }
   0x9   :  { %191 = vmatprep.subr.bf16.mxu0 %v3061_v0  ;;  %v3066_v4 = vld [vmem:[%s5055_s26 + $0x10] ss:$8 sps:$4 sm:$0xff]   ;;  %v3067_v5 = vld [vmem:[%s5055_s26 + $0x24] ss:$8 sps:$4 sm:$0xff]   ;;  %v3069_v6 = vld [vmem:[%s5055_s26 + $0x20] ss:$8 sps:$4 sm:$0xff]  }
   0xa   :  { %192 = vmatpush1.bf16.msra.mxu0 %v3063_v2  ;;  %v3070_v7 = vld [vmem:[%s5055_s26 + $0x34] ss:$8 sps:$4 sm:$0xff]   ;;  %v3072_v8 = vld [vmem:[%s5055_s26 + $0x30] ss:$8 sps:$4 sm:$0xff]   ;;  %v3073_v9 = vld [vmem:[%s5055_s26 + $0x44] ss:$8 sps:$4 sm:$0xff]  }
   0xb   :  { %193 = vmatprep.subr.bf16.mxu0 %v3064_v3  ;;  %v3075_v10 = vld [vmem:[%s5055_s26 + $0x40] ss:$8 sps:$4 sm:$0xff]   ;;  %v3076_v11 = vld [vmem:[%s5055_s26 + $0x54] ss:$8 sps:$4 sm:$0xff]   ;;  %v3078_v12 = vld [vmem:[%s5055_s26 + $0x50] ss:$8 sps:$4 sm:$0xff]  }
   0xc   :  { %v3079_v13 = vld [vmem:[%s5055_s26 + $0x64] ss:$8 sps:$4 sm:$0xff]   ;;  %v3081_v14 = vld [vmem:[%s5055_s26 + $0x60] ss:$8 sps:$4 sm:$0xff]   ;;  %v3082_v15 = vld [vmem:[%s5055_s26 + $0x74] ss:$8 sps:$4 sm:$0xff]  }
   0xd   :  { %v3084_v16 = vld [vmem:[%s5055_s26 + $0x70] ss:$8 sps:$4 sm:$0xff]   ;;  %v69_v17 = vld [vmem:[%s5056_s1] sm:$0xff]  ;;  %v70_v18 = vld [vmem:[%s5056_s1 + $0x8] sm:$0xff] }
   0xe   :  { %194 = vmatpush1.bf16.msra.mxu0 %v3066_v4  ;;  %v103_v19 = vpack.c.bf16 %v70_v18, %v69_v17  ;;  %v71_v20 = vld [vmem:[%s5056_s1 + $0x10] sm:$0xff]  ;;  %v72_v21 = vld [vmem:[%s5056_s1 + $0x18] sm:$0xff]  ;;  %v73_v23 = vld [vmem:[%s5056_s1 + $0x20] sm:$0xff] }
   0xf   :  { %195 = vmatprep.subr.bf16.mxu0 %v3067_v5  ;;  %v104_v22 = vpack.c.bf16 %v72_v21, %v71_v20  ;;  %v74_v24 = vld [vmem:[%s5056_s1 + $0x28] sm:$0xff]  ;;  %v75_v26 = vld [vmem:[%s5056_s1 + $0x30] sm:$0xff]  ;;  %v76_v27 = vld [vmem:[%s5056_s1 + $0x38] sm:$0xff] }
  0x10   :  { %v105_v25 = vpack.c.bf16 %v74_v24, %v73_v23  ;;  %v106_v28 = vpack.c.bf16 %v76_v27, %v75_v26  ;;  %v77_v29 = vld [vmem:[%s5056_s1 + $0x40] sm:$0xff]  ;;  %v78_v30 = vld [vmem:[%s5056_s1 + $0x48] sm:$0xff]  ;;  %v79_v32 = vld [vmem:[%s5056_s1 + $0x50] sm:$0xff] }
  0x11   :  { %v107_v31 = vpack.c.bf16 %v78_v30, %v77_v29  ;;  %v80_v33 = vld [vmem:[%s5056_s1 + $0x58] sm:$0xff]  ;;  %v81_v35 = vld [vmem:[%s5056_s1 + $0x60] sm:$0xff]  ;;  %v82_v36 = vld [vmem:[%s5056_s1 + $0x68] sm:$0xff] }
  0x12   :  { %196 = vmatpush1.bf16.msra.mxu0 %v3069_v6  ;;  %v108_v34 = vpack.c.bf16 %v80_v33, %v79_v32  ;;  %v109_v37 = vpack.c.bf16 %v82_v36, %v81_v35  ;;  %v83_v38 = vld [vmem:[%s5056_s1 + $0x70] sm:$0xff]  ;;  %v84_v39 = vld [vmem:[%s5056_s1 + $0x78] sm:$0xff]  ;;  %v3085_v41 = vld [vmem:[%s5057_s23] sm:$0xff]   ;;  %s5059_s1 = sld [smem:[#allocation6_spill]] }
  0x13   :  { %197 = vmatprep.subr.bf16.mxu0 %v3070_v7  ;;  %v110_v40 = vpack.c.bf16 %v84_v39, %v83_v38  ;;  %2931 = vmatprep.subr.bf16.mxu1 %v3085_v41  ;;  %v3086_v42 = vld [vmem:[%s5057_s23 + $0x8] sm:$0xff]   ;;  %v3087_v43 = vld [vmem:[%s5057_s23 + $0x10] sm:$0xff]   ;;  %v3088_v44 = vld [vmem:[%s5057_s23 + $0x18] sm:$0xff]  }
  0x14   :  { %2932 = vmatpush3.bf16.msra.mxu1 %v3085_v41  ;;  %v3089_v45 = vld [vmem:[%s5057_s23 + $0x20] sm:$0xff]   ;;  %v3090_v46 = vld [vmem:[%s5057_s23 + $0x28] sm:$0xff]   ;;  %v3091_v47 = vld [vmem:[%s5057_s23 + $0x30] sm:$0xff]  }
  0x15   :  { %2933 = vmatprep.subr.bf16.mxu1 %v3086_v42  ;;  %v3092_v48 = vld [vmem:[%s5057_s23 + $0x38] sm:$0xff]  }
  0x16   :  { %198 = vmatpush1.bf16.msra.mxu0 %v3072_v8 }
  0x17   :  { %199 = vmatprep.subr.bf16.mxu0 %v3073_v9 }
  0x18   :  { %2934 = vmatpush3.bf16.msra.mxu1 %v3086_v42 }
  0x19   :  { %2935 = vmatprep.subr.bf16.mxu1 %v3087_v43 }
  0x1a   :  { %200 = vmatpush1.bf16.msra.mxu0 %v3075_v10 }
  0x1b   :  { %201 = vmatprep.subr.bf16.mxu0 %v3076_v11 }
  0x1c   :  { %2936 = vmatpush3.bf16.msra.mxu1 %v3087_v43 }
  0x1d   :  { %2937 = vmatprep.subr.bf16.mxu1 %v3088_v44 }
  0x1e   :  { %202 = vmatpush1.bf16.msra.mxu0 %v3078_v12 }
  0x1f   :  { %203 = vmatprep.subr.bf16.mxu0 %v3079_v13 }
  0x20   :  { %2938 = vmatpush3.bf16.msra.mxu1 %v3088_v44 }
  0x21   :  { %2939 = vmatprep.subr.bf16.mxu1 %v3089_v45 }
  0x22   :  { %204 = vmatpush1.bf16.msra.mxu0 %v3081_v14 }
  0x23   :  { %205 = vmatprep.subr.bf16.mxu0 %v3082_v15 }
  0x24   :  { %2940 = vmatpush3.bf16.msra.mxu1 %v3089_v45 }
  0x25   :  { %2941 = vmatprep.subr.bf16.mxu1 %v3090_v46 }
  0x26   :  { %206 = vmatpush1.bf16.msra.mxu0 %v3084_v16 }
  0x28   :  { %2942 = vmatpush3.bf16.msra.mxu1 %v3090_v46 }
  0x29   :  { %224 = vmatmul.mubr.bf16.vlgmr.msra.gmra.mrb[0].mxu0 %v103_v19  ;;  %2943 = vmatprep.subr.bf16.mxu1 %v3091_v47 }
  0x2a   :  { %233 = vmatprep.mubr.bf16.mxu0 %v3183_v1 }
  0x2c   :  { %2944 = vmatpush3.bf16.msra.mxu1 %v3091_v47 }
  0x2d   :  { %2945 = vmatprep.subr.bf16.mxu1 %v3092_v48 }
  0x30   :  { %2946 = vmatpush3.bf16.msra.mxu1 %v3092_v48 }
  0x31   :  { %234 = vmatmul.mubr.bf16.gmra.mrb[4].mxu0 %v104_v22 }
  0x32   :  { %243 = vmatprep.mubr.bf16.mxu0 %v3183_v1 }
  0x39   :  { %244 = vmatmul.mubr.bf16.gmra.mrb[8].mxu0 %v105_v25 }
  0x3a   :  { %253 = vmatprep.mubr.bf16.mxu0 %v3183_v1 }
  0x41   :  { %254 = vmatmul.mubr.bf16.gmra.mrb[12].mxu0 %v106_v28 }
  0x42   :  { %263 = vmatprep.mubr.bf16.mxu0 %v3183_v1 }
  0x49   :  { %264 = vmatmul.mubr.bf16.gmra.mrb[16].mxu0 %v107_v31 }
  0x4a   :  { %273 = vmatprep.mubr.bf16.mxu0 %v3183_v1 }
  0x51   :  { %274 = vmatmul.mubr.bf16.gmra.mrb[20].mxu0 %v108_v34 }
  0x52   :  { %283 = vmatprep.mubr.bf16.mxu0 %v3183_v1 }
  0x59   :  { %284 = vmatmul.mubr.bf16.gmra.mrb[24].mxu0 %v109_v37 }
  0x5a   :  { %293 = vmatprep.mubr.bf16.mxu0 %v3183_v1 }
  0x61   :  { %294 = vmatmul.mubr.bf16.gmra.mrb[28].mxu0 %v110_v40 }
  0xfc   :  { %v3423_v49 = vpop.f32.mrb[0].mxu0 }
  0xfd   :  { %v3425_v50 = vpop.f32.mrb[1].mxu0  ;;  %v346_v52 = vmul.f32 %v3423_v49, %v3423_v49 }
  0xfe   :  { %v3427_v51 = vpop.f32.mrb[2].mxu0  ;;  %v347_v56 = vmul.f32 %v3425_v50, %v3425_v50 }
  0xff   :  { %v304_v53 = vadd.f32 %v3427_v51, %v3423_v49  ;;  %v348_v54 = vmul.f32 %v3427_v51, %v3427_v51  ;;  %v3435_v55 = vpop.f32.mrb[3].mxu0 }
 0x100   :  { %v325_v57 = vadd.f32 %v3435_v55, %v3425_v50  ;;  %v349_v58 = vmul.f32 %v3435_v55, %v3435_v55 }
 0x101   :  { %v378_v59 = vadd.f32 %v348_v54, %v346_v52 }
 0x102   :  { %v399_v60 = vadd.f32 %v349_v58, %v347_v56 }
 0x104   :  { %v3443_v61 = vpop.f32.mrb[4].mxu0 }
 0x105   :  { %v305_v62 = vadd.f32 %v304_v53, %v3443_v61  ;;  %v350_v63 = vmul.f32 %v3443_v61, %v3443_v61  ;;  %v3448_v0 = vpop.f32.mrb[5].mxu0 }
 0x106   :  { %v326_v2 = vadd.f32 %v325_v57, %v3448_v0  ;;  %v351_v3 = vmul.f32 %v3448_v0, %v3448_v0  ;;  %v3453_v4 = vpop.f32.mrb[6].mxu0 }
 0x107   :  { %v379_v5 = vadd.f32 %v378_v59, %v350_v63  ;;  %v306_v6 = vadd.f32 %v305_v62, %v3453_v4  ;;  %v352_v7 = vmul.f32 %v3453_v4, %v3453_v4  ;;  %v3458_v8 = vpop.f32.mrb[7].mxu0 }
 0x108   :  { %v400_v9 = vadd.f32 %v399_v60, %v351_v3  ;;  %v327_v10 = vadd.f32 %v326_v2, %v3458_v8  ;;  %v353_v11 = vmul.f32 %v3458_v8, %v3458_v8 }
 0x109   :  { %v380_v12 = vadd.f32 %v379_v5, %v352_v7 }
 0x10a   :  { %v401_v13 = vadd.f32 %v400_v9, %v353_v11 }
 0x10c   :  { %v3463_v14 = vpop.f32.mrb[8].mxu0 }
 0x10d   :  { %v307_v15 = vadd.f32 %v306_v6, %v3463_v14  ;;  %v354_v16 = vmul.f32 %v3463_v14, %v3463_v14  ;;  %v3468_v17 = vpop.f32.mrb[9].mxu0 }
 0x10e   :  { %v328_v18 = vadd.f32 %v327_v10, %v3468_v17  ;;  %v355_v19 = vmul.f32 %v3468_v17, %v3468_v17  ;;  %v3473_v20 = vpop.f32.mrb[10].mxu0 }
 0x10f   :  { %v381_v21 = vadd.f32 %v380_v12, %v354_v16  ;;  %v308_v22 = vadd.f32 %v307_v15, %v3473_v20  ;;  %v356_v23 = vmul.f32 %v3473_v20, %v3473_v20  ;;  %v3478_v24 = vpop.f32.mrb[11].mxu0 }
 0x110   :  { %v402_v25 = vadd.f32 %v401_v13, %v355_v19  ;;  %v329_v26 = vadd.f32 %v328_v18, %v3478_v24  ;;  %v357_v27 = vmul.f32 %v3478_v24, %v3478_v24 }
 0x111   :  { %v382_v28 = vadd.f32 %v381_v21, %v356_v23 }
 0x112   :  { %v403_v29 = vadd.f32 %v402_v25, %v357_v27 }
 0x114   :  { %v3483_v30 = vpop.f32.mrb[12].mxu0 }
 0x115   :  { %v309_v31 = vadd.f32 %v308_v22, %v3483_v30  ;;  %v358_v32 = vmul.f32 %v3483_v30, %v3483_v30  ;;  %v3488_v33 = vpop.f32.mrb[13].mxu0 }
 0x116   :  { %v330_v34 = vadd.f32 %v329_v26, %v3488_v33  ;;  %v359_v35 = vmul.f32 %v3488_v33, %v3488_v33  ;;  %v3493_v36 = vpop.f32.mrb[14].mxu0 }
 0x117   :  { %v383_v37 = vadd.f32 %v382_v28, %v358_v32  ;;  %v310_v38 = vadd.f32 %v309_v31, %v3493_v36  ;;  %v360_v39 = vmul.f32 %v3493_v36, %v3493_v36  ;;  %v3498_v40 = vpop.f32.mrb[15].mxu0 }
 0x118   :  { %v404_v41 = vadd.f32 %v403_v29, %v359_v35  ;;  %v331_v42 = vadd.f32 %v330_v34, %v3498_v40  ;;  %v361_v43 = vmul.f32 %v3498_v40, %v3498_v40 }
 0x119   :  { %v384_v44 = vadd.f32 %v383_v37, %v360_v39 }
 0x11a   :  { %v405_v45 = vadd.f32 %v404_v41, %v361_v43 }
 0x11c   :  { %v3503_v46 = vpop.f32.mrb[16].mxu0 }
 0x11d   :  { %v311_v47 = vadd.f32 %v310_v38, %v3503_v46  ;;  %v362_v48 = vmul.f32 %v3503_v46, %v3503_v46  ;;  %v3508_v52 = vpop.f32.mrb[17].mxu0 }
 0x11e   :  { %v332_v53 = vadd.f32 %v331_v42, %v3508_v52  ;;  %v363_v54 = vmul.f32 %v3508_v52, %v3508_v52  ;;  %v3513_v56 = vpop.f32.mrb[18].mxu0 }
 0x11f   :  { %v385_v57 = vadd.f32 %v384_v44, %v362_v48  ;;  %v312_v58 = vadd.f32 %v311_v47, %v3513_v56  ;;  %v364_v59 = vmul.f32 %v3513_v56, %v3513_v56  ;;  %v3518_v60 = vpop.f32.mrb[19].mxu0 }
 0x120   :  { %v406_v62 = vadd.f32 %v405_v45, %v363_v54  ;;  %v333_v63 = vadd.f32 %v332_v53, %v3518_v60  ;;  %v365_v2 = vmul.f32 %v3518_v60, %v3518_v60 }
 0x121   :  { %v386_v3 = vadd.f32 %v385_v57, %v364_v59 }
 0x122   :  { %v407_v5 = vadd.f32 %v406_v62, %v365_v2 }
 0x124   :  { %v3523_v6 = vpop.f32.mrb[20].mxu0 }
 0x125   :  { %v313_v7 = vadd.f32 %v312_v58, %v3523_v6  ;;  %v366_v9 = vmul.f32 %v3523_v6, %v3523_v6  ;;  %v3528_v10 = vpop.f32.mrb[21].mxu0 }
 0x126   :  { %v334_v11 = vadd.f32 %v333_v63, %v3528_v10  ;;  %v367_v12 = vmul.f32 %v3528_v10, %v3528_v10  ;;  %v3533_v13 = vpop.f32.mrb[22].mxu0 }
 0x127   :  { %v387_v15 = vadd.f32 %v386_v3, %v366_v9  ;;  %v314_v16 = vadd.f32 %v313_v7, %v3533_v13  ;;  %v368_v18 = vmul.f32 %v3533_v13, %v3533_v13  ;;  %v3538_v19 = vpop.f32.mrb[23].mxu0 }
 0x128   :  { %v408_v21 = vadd.f32 %v407_v5, %v367_v12  ;;  %v335_v22 = vadd.f32 %v334_v11, %v3538_v19  ;;  %v369_v23 = vmul.f32 %v3538_v19, %v3538_v19 }
 0x129   :  { %v388_v25 = vadd.f32 %v387_v15, %v368_v18 }
 0x12a   :  { %v409_v26 = vadd.f32 %v408_v21, %v369_v23 }
 0x12c   :  { %v3543_v27 = vpop.f32.mrb[24].mxu0 }
 0x12d   :  { %v315_v28 = vadd.f32 %v314_v16, %v3543_v27  ;;  %v370_v29 = vmul.f32 %v3543_v27, %v3543_v27  ;;  %v3548_v31 = vpop.f32.mrb[25].mxu0 }
 0x12e   :  { %v336_v32 = vadd.f32 %v335_v22, %v3548_v31  ;;  %v371_v34 = vmul.f32 %v3548_v31, %v3548_v31  ;;  %v3553_v35 = vpop.f32.mrb[26].mxu0 }
 0x12f   :  { %v389_v37 = vadd.f32 %v388_v25, %v370_v29  ;;  %v316_v38 = vadd.f32 %v315_v28, %v3553_v35  ;;  %v372_v39 = vmul.f32 %v3553_v35, %v3553_v35  ;;  %v3558_v41 = vpop.f32.mrb[27].mxu0 }
 0x130   :  { %v410_v42 = vadd.f32 %v409_v26, %v371_v34  ;;  %v337_v43 = vadd.f32 %v336_v32, %v3558_v41  ;;  %v373_v44 = vmul.f32 %v3558_v41, %v3558_v41 }
 0x131   :  { %v390_v45 = vadd.f32 %v389_v37, %v372_v39 }
 0x132   :  { %v411_v47 = vadd.f32 %v410_v42, %v373_v44 }
 0x134   :  { %v3563_v48 = vpop.f32.mrb[28].mxu0 }
 0x135   :  { %v317_v53 = vadd.f32 %v316_v38, %v3563_v48  ;;  %v374_v54 = vmul.f32 %v3563_v48, %v3563_v48  ;;  %v3568_v57 = vpop.f32.mrb[29].mxu0 }
 0x136   :  { %v338_v58 = vadd.f32 %v337_v43, %v3568_v57  ;;  %v375_v59 = vmul.f32 %v3568_v57, %v3568_v57  ;;  %v3573_v62 = vpop.f32.mrb[30].mxu0 }
 0x137   :  { %v391_v63 = vadd.f32 %v390_v45, %v374_v54  ;;  %v318_v2 = vadd.f32 %v317_v53, %v3573_v62  ;;  %v376_v3 = vmul.f32 %v3573_v62, %v3573_v62  ;;  %v301_v5 = vpop.f32.mrb[31].mxu0 }
 0x138   :  { %v412_v7 = vadd.f32 %v411_v47, %v375_v59  ;;  %v339_v9 = vadd.f32 %v338_v58, %v301_v5  ;;  %v377_v11 = vmul.f32 %v301_v5, %v301_v5 }
 0x139   :  { %v319_v12 = vrot.slane %v318_v2, 4  ;;  %v392_v15 = vadd.f32 %v391_v63, %v376_v3 }
 0x13a   :  { %v340_v16 = vrot.slane %v339_v9, 4  ;;  %v413_v18 = vadd.f32 %v412_v7, %v377_v11 }
 0x13b   :  { %v320_v21 = vadd.f32 %v319_v12, %v318_v2  ;;  %v393_v22 = vrot.slane %v392_v15, 4 }
 0x13c   :  { %v341_v23 = vadd.f32 %v340_v16, %v339_v9  ;;  %v414_v25 = vrot.slane %v413_v18, 4 }
 0x13d   :  { %v321_v26 = vrot.slane %v320_v21, 2  ;;  %v394_v28 = vadd.f32 %v393_v22, %v392_v15  ;;  %v3184_v22 = vmov 1966171168  }
 0x13e   :  { %v342_v29 = vrot.slane %v341_v23, 2  ;;  %v415_v32 = vadd.f32 %v414_v25, %v413_v18  ;;  %v438_v25 = vlaneseq }
 0x13f   :  { %v322_v34 = vadd.f32 %v321_v26, %v320_v21  ;;  %v395_v37 = vrot.slane %v394_v28, 2 }
 0x140   :  { %v343_v38 = vadd.f32 %v342_v29, %v341_v23  ;;  %v416_v39 = vrot.slane %v415_v32, 2  ;;  %v436_v23 = vunpack.c.l.s4 %v3184_v22 }
 0x141   :  { %v323_v42 = vrot.slane %v322_v34, 1  ;;  %v396_v43 = vadd.f32 %v395_v37, %v394_v28  ;;  %v439_v28 = vshrl.u32 %v438_v25, 7 }
 0x142   :  { %v344_v44 = vrot.slane %v343_v38, 1  ;;  %v417_v45 = vadd.f32 %v416_v39, %v415_v32  ;;  %v437_v26 = vunpack.c.0.s8 %v436_v23  ;;  %v101_v39 = vld [vmem:[%s5058_s0] sm:$0x3] }
 0x143   :  { %v324_v47 = vadd.f32 %v323_v42, %v322_v34  ;;  %v397_v53 = vrot.slane %v396_v43, 1 }
 0x144   :  { %v345_v54 = vadd.f32 %v344_v44, %v343_v38  ;;  %v418_v58 = vrot.slane %v417_v45, 1  ;;  %v3578_v32 = vsub.s32 %v437_v26, %v439_v28  ;;  %v3587_v44 = vsub.s32 1, %v439_v28 }
 0x145   :  { %v398_v59 = vadd.f32 %v397_v53, %v396_v43  ;;  %v420_v63 = vmul.f32 0.0078125, %v324_v47  ;;  %v3585_v43 = vsub.s32 0, %v439_v28 }
 0x146   :  { %v419_v2 = vadd.f32 %v418_v58, %v417_v45  ;;  %v421_v3 = vmul.f32 0.0078125, %v345_v54 }
 0x147   :  { %v422_v7 = vmul.f32 0.0078125, %v398_v59  ;;  %v424_v9 = vmul.f32 %v420_v63, %v420_v63 }
 0x148   :  { %v423_v11 = vmul.f32 0.0078125, %v419_v2  ;;  %v425_v12 = vmul.f32 %v421_v3, %v421_v3 }
 0x149   :  { %v426_v15 = vsub.f32 %v422_v7, %v424_v9 }
 0x14a   :  { %v427_v16 = vsub.f32 %v423_v11, %v425_v12 }
 0x14b   :  { %v428_v18 = vadd.f32 1e-05, %v426_v15 }
 0x14c   :  { %v429_v21 = vadd.f32 1e-05, %v427_v16 }
 0x14d   :  { %3165 = vrsqrt.f32 %v428_v18 }
 0x14e   :  { %3167 = vrsqrt.f32 %v429_v21 }
 0x157   :  { %v3166_v29 = vpop.eup %3165 }
 0x158   :  { %v3168_v34 = vpop.eup %3167 }
 0x159   :  { %v434_v37 = vcombine.low %v3166_v29, %v3168_v34 }
 0x15b   :  { %v441_v38 = vrot.slane %v434_v37, %v3578_v32 }
 0x15d   :  { %v448_v42 = vrot.slane %v441_v38, %v3578_v32 }
 0x15f   :  { %v450_v45 = vmul.f32 %v448_v42, %v101_v39 }
 0x161   :  { %v455_v47 = vrot.slane %v450_v45, %v3585_v43  ;;  %v459_v53 = vrot.slane %v450_v45, %v3587_v44 }
 0x163   :  { %v462_v54 = vmul.f32 %v455_v47, %v420_v63  ;;  %v463_v58 = vmul.f32 %v459_v53, %v421_v3  ;;  %v514_v59 = vmul.f32 %v459_v53, %v301_v5  ;;  %v484_v2 = vmul.f32 %v459_v53, %v3425_v50 }
 0x164   :  { %v486_v7 = vmul.f32 %v459_v53, %v3435_v55  ;;  %v488_v9 = vmul.f32 %v459_v53, %v3448_v0  ;;  %v490_v11 = vmul.f32 %v459_v53, %v3458_v8  ;;  %v492_v12 = vmul.f32 %v459_v53, %v3468_v17 }
 0x165   :  { %v466_v15 = vcombine.low %v462_v54, %v463_v58  ;;  %v494_v16 = vmul.f32 %v459_v53, %v3478_v24  ;;  %v496_v18 = vmul.f32 %v459_v53, %v3488_v33  ;;  %v498_v21 = vmul.f32 %v459_v53, %v3498_v40  ;;  %v102_v33 = vld [vmem:[%s5059_s1] sm:$0x3] }
 0x166   :  { %v500_v63 = vmul.f32 %v459_v53, %v3508_v52  ;;  %v502_v5 = vmul.f32 %v459_v53, %v3518_v60  ;;  %v504_v50 = vmul.f32 %v459_v53, %v3528_v10  ;;  %v506_v55 = vmul.f32 %v459_v53, %v3538_v19 }
 0x167   :  { %v473_v0 = vrot.slane %v466_v15, %v3578_v32  ;;  %v508_v8 = vmul.f32 %v459_v53, %v3548_v31  ;;  %v3606_v17 = vmul.f32 %v459_v53, %v3558_v41  ;;  %v3609_v24 = vmul.f32 %v459_v53, %v3568_v57 }
 0x168   :  { %v3615_v40 = vmul.f32 %v455_v47, %v3423_v49  ;;  %v3618_v52 = vmul.f32 %v455_v47, %v3427_v51  ;;  %v3621_v60 = vmul.f32 %v455_v47, %v3443_v61  ;;  %v3624_v10 = vmul.f32 %v455_v47, %v3453_v4 }
 0x169   :  { %v480_v19 = vrot.slane %v473_v0, %v3578_v32  ;;  %v3628_v31 = vmul.f32 %v455_v47, %v3463_v14  ;;  %v3631_v41 = vmul.f32 %v455_v47, %v3473_v20  ;;  %v3634_v49 = vmul.f32 %v455_v47, %v3483_v30 }
 0x16a   :  { %v3637_v51 = vmul.f32 %v455_v47, %v3493_v36  ;;  %v3640_v61 = vmul.f32 %v455_v47, %v3503_v46  ;;  %v3643_v4 = vmul.f32 %v455_v47, %v3513_v56  ;;  %v3646_v57 = vmul.f32 %v455_v47, %v3523_v6 }
 0x16b   :  { %v482_v14 = vsub.f32 %v102_v33, %v480_v19  ;;  %v3649_v3 = vmul.f32 %v455_v47, %v3533_v13  ;;  %v3652_v20 = vmul.f32 %v455_v47, %v3543_v27  ;;  %v3655_v30 = vmul.f32 %v455_v47, %v3553_v35 }
 0x16c   :  { %v3658_v36 = vmul.f32 %v455_v47, %v3563_v48  ;;  %v3661_v46 = vmul.f32 %v455_v47, %v3573_v62 }
 0x16d   :  { %v523_v56 = vrot.slane %v482_v14, %v3587_v44  ;;  %v3665_v6 = vrot.slane %v482_v14, %v3585_v43 }
 0x16f   :  { %v3667_v22 = vadd.f32 %v523_v56, %v514_v59  ;;  %v527_v13 = vadd.f32 %v523_v56, %v484_v2  ;;  %v529_v23 = vadd.f32 %v523_v56, %v486_v7  ;;  %v531_v27 = vadd.f32 %v523_v56, %v488_v9 }
 0x170   :  { %v533_v25 = vadd.f32 %v523_v56, %v490_v11  ;;  %v535_v26 = vadd.f32 %v523_v56, %v492_v12  ;;  %v537_v35 = vadd.f32 %v523_v56, %v494_v16  ;;  %v539_v28 = vadd.f32 %v523_v56, %v496_v18 }
 0x171   :  { %v573_v48 = vmul.f32 0.01, %v3667_v22  ;;  %v558_v29 = vmul.f32 0.01, %v527_v13  ;;  %v559_v34 = vmul.f32 0.01, %v529_v23  ;;  %v541_v62 = vadd.f32 %v523_v56, %v498_v21 }
 0x172   :  { %v560_v37 = vmul.f32 0.01, %v531_v27  ;;  %v561_v38 = vmul.f32 0.01, %v533_v25  ;;  %v562_v39 = vmul.f32 0.01, %v535_v26  ;;  %v543_v42 = vadd.f32 %v523_v56, %v500_v63 }
 0x173   :  { %v574_v45 = vmax.f32 %v527_v13, %v558_v29  ;;  %v575_v47 = vmax.f32 %v529_v23, %v559_v34  ;;  %v563_v53 = vmul.f32 0.01, %v537_v35  ;;  %v564_v54 = vmul.f32 0.01, %v539_v28 }
 0x174   :  { %v576_v58 = vmax.f32 %v531_v27, %v560_v37  ;;  %v577_v59 = vmax.f32 %v533_v25, %v561_v38  ;;  %v578_v2 = vmax.f32 %v535_v26, %v562_v39  ;;  %v565_v7 = vmul.f32 0.01, %v541_v62 }
 0x175   :  { %v608_v9 = vpack.c.bf16 %v575_v47, %v574_v45  ;;  %v579_v11 = vmax.f32 %v537_v35, %v563_v53  ;;  %v580_v12 = vmax.f32 %v539_v28, %v564_v54  ;;  %v545_v15 = vadd.f32 %v523_v56, %v502_v5  ;;  %v3104_v53 = vld [vmem:[%s5060_s2 + $0x34] ss:$8 sps:$4 sm:$0xff]   ;;  %v3102_v54 = vld [vmem:[%s5060_s2 + $0x30] ss:$8 sps:$4 sm:$0xff]  }
 0x176   :  { %v609_v16 = vpack.c.bf16 %v577_v59, %v576_v58  ;;  %v581_v18 = vmax.f32 %v541_v62, %v565_v7  ;;  %v566_v0 = vmul.f32 0.01, %v543_v42  ;;  %v547_v21 = vadd.f32 %v523_v56, %v504_v50  ;;  %v3107_v58 = vld [vmem:[%s5060_s2 + $0x44] ss:$8 sps:$4 sm:$0xff]   ;;  %v3105_v59 = vld [vmem:[%s5060_s2 + $0x40] ss:$8 sps:$4 sm:$0xff]  }
 0x177   :  { %2947 = vmatprep.mubr.bf16.mxu1 %v608_v9  ;;  %v610_v33 = vpack.c.bf16 %v579_v11, %v578_v2  ;;  %v567_v19 = vmul.f32 0.01, %v545_v15  ;;  %v549_v63 = vadd.f32 %v523_v56, %v506_v55  ;;  %v551_v14 = vadd.f32 %v523_v56, %v508_v8  ;;  %v3110_v2 = vld [vmem:[%s5060_s2 + $0x54] ss:$8 sps:$4 sm:$0xff]   ;;  %v3108_v7 = vld [vmem:[%s5060_s2 + $0x50] ss:$8 sps:$4 sm:$0xff]  }
 0x178   :  { %2948 = vmatmul.mubr.bf16.vlgmr.msra.gmra.mrb[0].mxu1 %v609_v16  ;;  %v611_v13 = vpack.c.bf16 %v581_v18, %v580_v12  ;;  %v582_v23 = vmax.f32 %v543_v42, %v566_v0  ;;  %v568_v27 = vmul.f32 0.01, %v547_v21  ;;  %v553_v25 = vadd.f32 %v523_v56, %v3606_v17  ;;  %v3113_v9 = vld [vmem:[%s5060_s2 + $0x64] ss:$8 sps:$4 sm:$0xff]   ;;  %v3111_v11 = vld [vmem:[%s5060_s2 + $0x60] ss:$8 sps:$4 sm:$0xff]  }
 0x179   :  { %2951 = vmatprep.mubr.bf16.mxu1 %v610_v33  ;;  %v583_v26 = vmax.f32 %v545_v15, %v567_v19  ;;  %v569_v35 = vmul.f32 0.01, %v549_v63  ;;  %v570_v28 = vmul.f32 0.01, %v551_v14  ;;  %v555_v5 = vadd.f32 %v523_v56, %v3609_v24  ;;  %v3116_v12 = vld [vmem:[%s5060_s2 + $0x74] ss:$8 sps:$4 sm:$0xff]  }
 0x17a   :  { %v584_v29 = vmax.f32 %v547_v21, %v568_v27  ;;  %v571_v34 = vmul.f32 0.01, %v553_v25  ;;  %v589_v50 = vmax.f32 %v3667_v22, %v573_v48  ;;  %v3675_v55 = vadd.f32 %v3665_v6, %v3615_v40  ;;  %v3114_v15 = vld [vmem:[%s5060_s2 + $0x70] ss:$8 sps:$4 sm:$0xff]  }
 0x17b   :  { %v612_v8 = vpack.c.bf16 %v583_v26, %v582_v23  ;;  %v585_v62 = vmax.f32 %v549_v63, %v569_v35  ;;  %v586_v37 = vmax.f32 %v551_v14, %v570_v28  ;;  %v572_v38 = vmul.f32 0.01, %v555_v5 }
 0x17c   :  { %v587_v39 = vmax.f32 %v553_v25, %v571_v34  ;;  %v3679_v17 = vadd.f32 %v3665_v6, %v3618_v52  ;;  %v3683_v24 = vadd.f32 %v3665_v6, %v3621_v60  ;;  %v3687_v56 = vadd.f32 %v3665_v6, %v3624_v10 }
 0x17d   :  { %v613_v22 = vpack.c.bf16 %v585_v62, %v584_v29  ;;  %v588_v40 = vmax.f32 %v555_v5, %v572_v38  ;;  %v3691_v48 = vadd.f32 %v3665_v6, %v3628_v31  ;;  %v3695_v42 = vadd.f32 %v3665_v6, %v3631_v41 }
 0x17e   :  { %v614_v52 = vpack.c.bf16 %v587_v39, %v586_v37  ;;  %v3699_v45 = vadd.f32 %v3665_v6, %v3634_v49  ;;  %v3703_v60 = vadd.f32 %v3665_v6, %v3637_v51  ;;  %v3707_v10 = vadd.f32 %v3665_v6, %v3640_v61 }
 0x17f   :  { %v615_v47 = vpack.c.bf16 %v589_v50, %v588_v40  ;;  %v3711_v31 = vadd.f32 %v3665_v6, %v3643_v4  ;;  %v3715_v41 = vadd.f32 %v3665_v6, %v3646_v57  ;;  %v3719_v49 = vadd.f32 %v3665_v6, %v3649_v3  ;;  %v3095_v3 = vld [vmem:[%s5060_s2 + $0x4] ss:$8 sps:$4 sm:$0xff]  }
 0x180   :  { %2952 = vmatmul.mubr.bf16.gmra.mrb[4].mxu1 %v611_v13  ;;  %v3723_v51 = vadd.f32 %v3665_v6, %v3652_v20  ;;  %v3727_v61 = vadd.f32 %v3665_v6, %v3655_v30  ;;  %v3731_v4 = vadd.f32 %v3665_v6, %v3658_v36  ;;  %v3735_v57 = vadd.f32 %v3665_v6, %v3661_v46  ;;  %v3093_v20 = vld [vmem:[%s5060_s2] ss:$8 sps:$4 sm:$0xff]   ;;  %v3098_v30 = vld [vmem:[%s5060_s2 + $0x14] ss:$8 sps:$4 sm:$0xff]   ;;  %v3096_v36 = vld [vmem:[%s5060_s2 + $0x10] ss:$8 sps:$4 sm:$0xff]  }
 0x181   :  { %2955 = vmatprep.mubr.bf16.mxu1 %v612_v8  ;;  %1026 = vmatprep.subr.bf16.mxu1 %v3095_v3  ;;  %v3101_v46 = vld [vmem:[%s5060_s2 + $0x24] ss:$8 sps:$4 sm:$0xff]   ;;  %v3099_v6 = vld [vmem:[%s5060_s2 + $0x20] ss:$8 sps:$4 sm:$0xff]  }
 0x182   :  { %1027 = vmatpush1.bf16.msra.mxu1 %v3093_v20 }
 0x183   :  { %1028 = vmatprep.subr.bf16.mxu1 %v3098_v30 }
 0x186   :  { %1029 = vmatpush1.bf16.msra.mxu1 %v3096_v36 }
 0x187   :  { %1030 = vmatprep.subr.bf16.mxu1 %v3101_v46 }
 0x188   :  { %2956 = vmatmul.mubr.bf16.gmra.mrb[8].mxu1 %v613_v22 }
 0x189   :  { %2959 = vmatprep.mubr.bf16.mxu1 %v614_v52 }
 0x18a   :  { %1031 = vmatpush1.bf16.msra.mxu1 %v3099_v6 }
 0x18b   :  { %1032 = vmatprep.subr.bf16.mxu1 %v3104_v53 }
 0x18e   :  { %1033 = vmatpush1.bf16.msra.mxu1 %v3102_v54 }
 0x18f   :  { %1034 = vmatprep.subr.bf16.mxu1 %v3107_v58 }
 0x190   :  { %2960 = vmatmul.mubr.bf16.gmra.mrb[12].mxu1 %v615_v47 }
 0x191   :  { %1058 = vmatprep.mubr.bf16.mxu1 %v3183_v1 }
 0x192   :  { %1035 = vmatpush1.bf16.msra.mxu1 %v3105_v59 }
 0x193   :  { %1036 = vmatprep.subr.bf16.mxu1 %v3110_v2 }
 0x196   :  { %1037 = vmatpush1.bf16.msra.mxu1 %v3108_v7 }
 0x197   :  { %1038 = vmatprep.subr.bf16.mxu1 %v3113_v9 }
 0x19a   :  { %1039 = vmatpush1.bf16.msra.mxu1 %v3111_v11 }
 0x19b   :  { %1040 = vmatprep.subr.bf16.mxu1 %v3116_v12 }
 0x19e   :  { %1041 = vmatpush1.bf16.msra.mxu1 %v3114_v15 }
 0x24b   :  { %v3786_v16 = vpop.f32.mrb[0].mxu1 }
 0x24c   :  { %v3788_v18 = vpop.f32.mrb[1].mxu1  ;;  %v784_v14 = vmul.f32 %v3786_v16, %v3786_v16 }
 0x24d   :  { %v3790_v0 = vpop.f32.mrb[2].mxu1  ;;  %v782_v33 = vmul.f32 %v3788_v18, %v3788_v18 }
 0x24e   :  { %v3792_v21 = vpop.f32.mrb[3].mxu1  ;;  %v785_v27 = vmul.f32 %v3790_v0, %v3790_v0 }
 0x24f   :  { %v761_v19 = vadd.f32 %v3792_v21, %v3788_v18  ;;  %v783_v63 = vmul.f32 %v3792_v21, %v3792_v21 }
 0x251   :  { %v762_v13 = vadd.f32 %v3786_v16, %v761_v19  ;;  %v798_v23 = vadd.f32 %v783_v63, %v782_v33 }
 0x253   :  { %v799_v25 = vadd.f32 %v798_v23, %v784_v14  ;;  %v3805_v26 = vpop.f32.mrb[4].mxu1  ;;  %v763_v35 = vadd.f32 %v3790_v0, %v762_v13 }
 0x254   :  { %v3808_v28 = vpop.f32.mrb[5].mxu1  ;;  %v788_v39 = vmul.f32 %v3805_v26, %v3805_v26 }
 0x255   :  { %v764_v5 = vadd.f32 %v763_v35, %v3808_v28  ;;  %v786_v29 = vmul.f32 %v3808_v28, %v3808_v28  ;;  %v800_v34 = vadd.f32 %v799_v25, %v785_v27  ;;  %v3813_v50 = vpop.f32.mrb[6].mxu1 }
 0x256   :  { %v3815_v8 = vpop.f32.mrb[7].mxu1  ;;  %v789_v52 = vmul.f32 %v3813_v50, %v3813_v50 }
 0x257   :  { %v801_v62 = vadd.f32 %v800_v34, %v786_v29  ;;  %v765_v37 = vadd.f32 %v764_v5, %v3815_v8  ;;  %v787_v38 = vmul.f32 %v3815_v8, %v3815_v8 }
 0x259   :  { %v766_v22 = vadd.f32 %v3805_v26, %v765_v37  ;;  %v802_v40 = vadd.f32 %v801_v62, %v787_v38 }
 0x25b   :  { %v803_v47 = vadd.f32 %v802_v40, %v788_v39  ;;  %v3825_v3 = vpop.f32.mrb[8].mxu1  ;;  %v767_v20 = vadd.f32 %v3813_v50, %v766_v22 }
 0x25c   :  { %v3828_v30 = vpop.f32.mrb[9].mxu1  ;;  %v792_v7 = vmul.f32 %v3825_v3, %v3825_v3 }
 0x25d   :  { %v768_v36 = vadd.f32 %v767_v20, %v3828_v30  ;;  %v790_v46 = vmul.f32 %v3828_v30, %v3828_v30  ;;  %v804_v6 = vadd.f32 %v803_v47, %v789_v52  ;;  %v3833_v53 = vpop.f32.mrb[10].mxu1 }
 0x25e   :  { %v3835_v54 = vpop.f32.mrb[11].mxu1  ;;  %v793_v12 = vmul.f32 %v3833_v53, %v3833_v53 }
 0x25f   :  { %v805_v58 = vadd.f32 %v804_v6, %v790_v46  ;;  %v769_v59 = vadd.f32 %v768_v36, %v3835_v54  ;;  %v791_v2 = vmul.f32 %v3835_v54, %v3835_v54 }
 0x261   :  { %v770_v9 = vadd.f32 %v3825_v3, %v769_v59  ;;  %v806_v11 = vadd.f32 %v805_v58, %v791_v2 }
 0x263   :  { %v807_v15 = vadd.f32 %v806_v11, %v792_v7  ;;  %v3845_v33 = vpop.f32.mrb[12].mxu1  ;;  %v771_v19 = vadd.f32 %v3833_v53, %v770_v9 }
 0x264   :  { %v746_v63 = vpop.f32.mrb[13].mxu1  ;;  %v796_v34 = vmul.f32 %v3845_v33, %v3845_v33 }
 0x265   :  { %v772_v14 = vadd.f32 %v771_v19, %v746_v63  ;;  %v794_v13 = vmul.f32 %v746_v63, %v746_v63  ;;  %v808_v23 = vadd.f32 %v807_v15, %v793_v12  ;;  %v3848_v27 = vpop.f32.mrb[14].mxu1 }
 0x266   :  { %v749_v25 = vpop.f32.mrb[15].mxu1  ;;  %v797_v38 = vmul.f32 %v3848_v27, %v3848_v27 }
 0x267   :  { %v809_v35 = vadd.f32 %v808_v23, %v794_v13  ;;  %v773_v5 = vadd.f32 %v772_v14, %v749_v25  ;;  %v795_v29 = vmul.f32 %v749_v25, %v749_v25  ;;  %v606_v23 = vld [vmem:[%s5029_s5] sm:$0x1] }
 0x269   :  { %v774_v62 = vadd.f32 %v3845_v33, %v773_v5  ;;  %v810_v37 = vadd.f32 %v809_v35, %v795_v29  ;;  %v607_v29 = vld [vmem:[%s5030_s6] sm:$0x1] }
 0x26b   :  { %v775_v39 = vadd.f32 %v3848_v27, %v774_v62  ;;  %v811_v22 = vadd.f32 %v810_v37, %v796_v34 }
 0x26d   :  { %v776_v40 = vrot.slane %v775_v39, 4  ;;  %v812_v52 = vadd.f32 %v811_v22, %v797_v38 }
 0x26f   :  { %v777_v47 = vadd.f32 %v776_v40, %v775_v39  ;;  %v813_v20 = vrot.slane %v812_v52, 4 }
 0x271   :  { %v778_v36 = vrot.slane %v777_v47, 2  ;;  %v814_v46 = vadd.f32 %v813_v20, %v812_v52 }
 0x273   :  { %v779_v6 = vadd.f32 %v778_v36, %v777_v47  ;;  %v815_v58 = vrot.slane %v814_v46, 2 }
 0x275   :  { %v780_v59 = vrot.slane %v779_v6, 1  ;;  %v816_v2 = vadd.f32 %v815_v58, %v814_v46 }
 0x277   :  { %v781_v7 = vadd.f32 %v780_v59, %v779_v6  ;;  %v817_v9 = vrot.slane %v816_v2, 1 }
 0x279   :  { %v818_v11 = vadd.f32 %v817_v9, %v816_v2  ;;  %v819_v12 = vmul.f32 0.0078125, %v781_v7 }
 0x27b   :  { %v820_v15 = vmul.f32 0.0078125, %v818_v11  ;;  %v821_v19 = vmul.f32 %v819_v12, %v819_v12 }
 0x27d   :  { %v822_v14 = vsub.f32 %v820_v15, %v821_v19 }
 0x27f   :  { %v823_v13 = vadd.f32 1e-05, %v822_v14 }
 0x281   :  { %3169 = vrsqrt.f32 %v823_v13 }
 0x28b   :  { %v3170_v35 = vpop.eup %3169 }
 0x28c   :  { %v825_v5 = vmul.f32 %v3170_v35, %v606_v23 }
 0x28e   :  { %v826_v34 = vmul.f32 %v825_v5, %v819_v12  ;;  %v3863_v62 = vrot.slane %v825_v5, %v3585_v43 }
 0x290   :  { %v827_v37 = vsub.f32 %v607_v29, %v826_v34  ;;  %v847_v38 = vmul.f32 %v3863_v62, %v749_v25  ;;  %v834_v39 = vmul.f32 %v3863_v62, %v3788_v18  ;;  %v835_v22 = vmul.f32 %v3863_v62, %v3792_v21 }
 0x291   :  { %v836_v40 = vmul.f32 %v3786_v16, %v3863_v62  ;;  %v837_v52 = vmul.f32 %v3790_v0, %v3863_v62  ;;  %v838_v47 = vmul.f32 %v3863_v62, %v3808_v28  ;;  %v839_v20 = vmul.f32 %v3863_v62, %v3815_v8 }
 0x292   :  { %v3879_v25 = vrot.slane %v827_v37, %v3585_v43  ;;  %v840_v18 = vmul.f32 %v3805_v26, %v3863_v62  ;;  %v841_v21 = vmul.f32 %v3813_v50, %v3863_v62  ;;  %v842_v16 = vmul.f32 %v3863_v62, %v3828_v30 }
 0x293   :  { %v843_v0 = vmul.f32 %v3863_v62, %v3835_v54  ;;  %v844_v28 = vmul.f32 %v3825_v3, %v3863_v62  ;;  %v845_v8 = vmul.f32 %v3833_v53, %v3863_v62  ;;  %v846_v36 = vmul.f32 %v3863_v62, %v746_v63 }
 0x294   :  { %v869_v46 = vadd.f32 %v3879_v25, %v847_v38  ;;  %v856_v26 = vadd.f32 %v3879_v25, %v834_v39  ;;  %v857_v50 = vadd.f32 %v3879_v25, %v835_v22  ;;  %v858_v6 = vadd.f32 %v3879_v25, %v836_v40 }
 0x295   :  { %v859_v30 = vadd.f32 %v3879_v25, %v837_v52  ;;  %v860_v54 = vadd.f32 %v3879_v25, %v838_v47  ;;  %v861_v58 = vadd.f32 %v3879_v25, %v839_v20  ;;  %v862_v3 = vadd.f32 %v3879_v25, %v840_v18 }
 0x296   :  { %v885_v59 = vmul.f32 0.01, %v869_v46  ;;  %v872_v53 = vmul.f32 0.01, %v856_v26  ;;  %v873_v2 = vmul.f32 0.01, %v857_v50  ;;  %v863_v63 = vadd.f32 %v3879_v25, %v841_v21 }
 0x297   :  { %v874_v7 = vmul.f32 0.01, %v858_v6  ;;  %v875_v9 = vmul.f32 0.01, %v859_v30  ;;  %v876_v11 = vmul.f32 0.01, %v860_v54  ;;  %v864_v12 = vadd.f32 %v3879_v25, %v842_v16 }
 0x298   :  { %v901_v15 = vmax.f32 %v869_v46, %v885_v59  ;;  %v888_v19 = vmax.f32 %v856_v26, %v872_v53  ;;  %v889_v14 = vmax.f32 %v857_v50, %v873_v2  ;;  %v877_v13 = vmul.f32 0.01, %v861_v58 }
 0x299   :  { %v890_v23 = vmax.f32 %v858_v6, %v874_v7  ;;  %v891_v35 = vmax.f32 %v859_v30, %v875_v9  ;;  %v892_v5 = vmax.f32 %v860_v54, %v876_v11  ;;  %v878_v29 = vmul.f32 0.01, %v862_v3 }
 0x29a   :  { %v904_v34 = vadd.f32 %v888_v19, %v3675_v55  ;;  %v905_v37 = vadd.f32 %v889_v14, %v3679_v17  ;;  %v893_v38 = vmax.f32 %v861_v58, %v877_v13  ;;  %v879_v39 = vmul.f32 0.01, %v863_v63  ;;  %v3122_v13 = vld [vmem:[%s5031_s10 + $0x28] sm:$0xff]  }
 0x29b   :  { %v906_v22 = vadd.f32 %v890_v23, %v3683_v24  ;;  %v907_v40 = vadd.f32 %v891_v35, %v3687_v56  ;;  %v908_v52 = vadd.f32 %v892_v5, %v3691_v48  ;;  %v894_v47 = vmax.f32 %v862_v3, %v878_v29  ;;  %v3123_v23 = vld [vmem:[%s5031_s10 + $0x30] sm:$0xff]  }
 0x29c   :  { %v938_v20 = vpack.c.bf16 %v905_v37, %v904_v34  ;;  %v909_v18 = vadd.f32 %v893_v38, %v3695_v42  ;;  %v895_v21 = vmax.f32 %v863_v63, %v879_v39  ;;  %v865_v16 = vadd.f32 %v3879_v25, %v843_v0 }
 0x29d   :  { %v939_v46 = vpack.c.bf16 %v907_v40, %v906_v22  ;;  %v910_v55 = vadd.f32 %v894_v47, %v3699_v45  ;;  %v880_v26 = vmul.f32 0.01, %v864_v12  ;;  %v866_v17 = vadd.f32 %v3879_v25, %v844_v28  ;;  %v3124_v22 = vld [vmem:[%s5031_s10 + $0x38] sm:$0xff]  }
 0x29e   :  { %1059 = vmatmul.mubr.bf16.vlgmr.msra.gmra.mrb[16].mxu1 %v938_v20  ;;  %v940_v50 = vpack.c.bf16 %v909_v18, %v908_v52  ;;  %v911_v24 = vadd.f32 %v895_v21, %v3703_v60  ;;  %v881_v56 = vmul.f32 0.01, %v865_v16  ;;  %v867_v48 = vadd.f32 %v3879_v25, %v845_v8 }
 0x29f   :  { %1068 = vmatprep.mubr.bf16.mxu1 %v3183_v1  ;;  %v896_v6 = vmax.f32 %v864_v12, %v880_v26  ;;  %v882_v42 = vmul.f32 0.01, %v866_v17  ;;  %v868_v30 = vadd.f32 %v3879_v25, %v846_v36  ;;  %v917_v0 = vadd.f32 %v901_v15, %v3727_v61 }
 0x2a0   :  { %v941_v54 = vpack.c.bf16 %v911_v24, %v910_v55  ;;  %v897_v45 = vmax.f32 %v865_v16, %v881_v56  ;;  %v883_v58 = vmul.f32 0.01, %v867_v48  ;;  %v848_v28 = vmul.f32 %v3845_v33, %v3863_v62 }
 0x2a1   :  { %v912_v3 = vadd.f32 %v896_v6, %v3707_v10  ;;  %v898_v60 = vmax.f32 %v866_v17, %v882_v42  ;;  %v884_v59 = vmul.f32 0.01, %v868_v30  ;;  %v849_v8 = vmul.f32 %v3848_v27, %v3863_v62 }
 0x2a2   :  { %v913_v53 = vadd.f32 %v897_v45, %v3711_v31  ;;  %v899_v2 = vmax.f32 %v867_v48, %v883_v58  ;;  %v870_v36 = vadd.f32 %v3879_v25, %v848_v28 }
 0x2a3   :  { %v914_v61 = vadd.f32 %v898_v60, %v3715_v41  ;;  %v900_v63 = vmax.f32 %v868_v30, %v884_v59  ;;  %v871_v7 = vadd.f32 %v3879_v25, %v849_v8  ;;  %v3121_v25 = vld [vmem:[%s5031_s10 + $0x20] sm:$0xff]  }
 0x2a4   :  { %v942_v9 = vpack.c.bf16 %v913_v53, %v912_v3  ;;  %v915_v33 = vadd.f32 %v899_v2, %v3719_v49  ;;  %v886_v11 = vmul.f32 0.01, %v870_v36  ;;  %v3117_v49 = vld [vmem:[%s5031_s10] sm:$0xff]  }
 0x2a5   :  { %v916_v10 = vadd.f32 %v900_v63, %v3723_v51  ;;  %v887_v12 = vmul.f32 0.01, %v871_v7  ;;  %2963 = vmatprep.subr.bf16.mxu0 %v3117_v49  ;;  %v3118_v51 = vld [vmem:[%s5031_s10 + $0x8] sm:$0xff]  }
 0x2a6   :  { %1069 = vmatmul.mubr.bf16.gmra.mrb[20].mxu1 %v939_v46  ;;  %v943_v15 = vpack.c.bf16 %v915_v33, %v914_v61  ;;  %v902_v27 = vmax.f32 %v870_v36, %v886_v11  ;;  %2964 = vmatpush3.bf16.msra.mxu0 %v3117_v49 }
 0x2a7   :  { %1078 = vmatprep.mubr.bf16.mxu1 %v3183_v1  ;;  %v944_v31 = vpack.c.bf16 %v917_v0, %v916_v10  ;;  %v903_v62 = vmax.f32 %v871_v7, %v887_v12  ;;  %2965 = vmatprep.subr.bf16.mxu0 %v3118_v51 }
 0x2a8   :  { %v918_v19 = vadd.f32 %v902_v27, %v3731_v4  ;;  %v3119_v4 = vld [vmem:[%s5031_s10 + $0x10] sm:$0xff]  }
 0x2a9   :  { %v919_v41 = vadd.f32 %v903_v62, %v3735_v57  ;;  %v3120_v57 = vld [vmem:[%s5031_s10 + $0x18] sm:$0xff]  }
 0x2aa   :  { %2966 = vmatpush3.bf16.msra.mxu0 %v3118_v51 }
 0x2ab   :  { %v945_v14 = vpack.c.bf16 %v919_v41, %v918_v19  ;;  %2967 = vmatprep.subr.bf16.mxu0 %v3119_v4 }
 0x2ae   :  { %1079 = vmatmul.mubr.bf16.gmra.mrb[24].mxu1 %v940_v50  ;;  %2968 = vmatpush3.bf16.msra.mxu0 %v3119_v4 }
 0x2af   :  { %1088 = vmatprep.mubr.bf16.mxu1 %v3183_v1  ;;  %2969 = vmatprep.subr.bf16.mxu0 %v3120_v57 }
 0x2b2   :  { %2970 = vmatpush3.bf16.msra.mxu0 %v3120_v57 }
 0x2b3   :  { %2971 = vmatprep.subr.bf16.mxu0 %v3121_v25 }
 0x2b6   :  { %1089 = vmatmul.mubr.bf16.gmra.mrb[28].mxu1 %v941_v54  ;;  %2972 = vmatpush3.bf16.msra.mxu0 %v3121_v25 }
 0x2b7   :  { %1098 = vmatprep.mubr.bf16.mxu1 %v3183_v1  ;;  %2973 = vmatprep.subr.bf16.mxu0 %v3122_v13 }
 0x2ba   :  { %2974 = vmatpush3.bf16.msra.mxu0 %v3122_v13 }
 0x2bb   :  { %2975 = vmatprep.subr.bf16.mxu0 %v3123_v23 }
 0x2be   :  { %1099 = vmatmul.mubr.bf16.gmra.mrb[32].mxu1 %v942_v9  ;;  %2976 = vmatpush3.bf16.msra.mxu0 %v3123_v23 }
 0x2bf   :  { %1108 = vmatprep.mubr.bf16.mxu1 %v3183_v1  ;;  %2977 = vmatprep.subr.bf16.mxu0 %v3124_v22 }
 0x2c2   :  { %2978 = vmatpush3.bf16.msra.mxu0 %v3124_v22 }
 0x2c6   :  { %1109 = vmatmul.mubr.bf16.gmra.mrb[36].mxu1 %v943_v15 }
 0x2c7   :  { %1118 = vmatprep.mubr.bf16.mxu1 %v3183_v1 }
 0x2ce   :  { %1119 = vmatmul.mubr.bf16.gmra.mrb[40].mxu1 %v944_v31 }
 0x2cf   :  { %1128 = vmatprep.mubr.bf16.mxu1 %v3183_v1 }
 0x2d6   :  { %1129 = vmatmul.mubr.bf16.gmra.mrb[44].mxu1 %v945_v14 }
 0x371   :  { %v3958_v35 = vpop.f32.mrb[16].mxu1 }
 0x372   :  { %v3960_v5 = vpop.f32.mrb[17].mxu1  ;;  %v1181_v34 = vmul.f32 %v3958_v35, %v3958_v35 }
 0x373   :  { %v3962_v29 = vpop.f32.mrb[18].mxu1  ;;  %v1182_v40 = vmul.f32 %v3960_v5, %v3960_v5 }
 0x374   :  { %v1139_v37 = vadd.f32 %v3962_v29, %v3958_v35  ;;  %v1183_v38 = vmul.f32 %v3962_v29, %v3962_v29  ;;  %v3970_v39 = vpop.f32.mrb[19].mxu1 }
 0x375   :  { %v1160_v52 = vadd.f32 %v3970_v39, %v3960_v5  ;;  %v1184_v47 = vmul.f32 %v3970_v39, %v3970_v39 }
 0x376   :  { %v1213_v20 = vadd.f32 %v1183_v38, %v1181_v34 }
 0x377   :  { %v1234_v18 = vadd.f32 %v1184_v47, %v1182_v40 }
 0x379   :  { %v3981_v21 = vpop.f32.mrb[20].mxu1 }
 0x37a   :  { %v1140_v16 = vadd.f32 %v1139_v37, %v3981_v21  ;;  %v1185_v46 = vmul.f32 %v3981_v21, %v3981_v21  ;;  %v3986_v55 = vpop.f32.mrb[21].mxu1 }
 0x37b   :  { %v1161_v26 = vadd.f32 %v1160_v52, %v3986_v55  ;;  %v1186_v17 = vmul.f32 %v3986_v55, %v3986_v55  ;;  %v3991_v50 = vpop.f32.mrb[22].mxu1 }
 0x37c   :  { %v1214_v24 = vadd.f32 %v1213_v20, %v1185_v46  ;;  %v1141_v56 = vadd.f32 %v1140_v16, %v3991_v50  ;;  %v1187_v48 = vmul.f32 %v3991_v50, %v3991_v50  ;;  %v3996_v6 = vpop.f32.mrb[23].mxu1 }
 0x37d   :  { %v1235_v42 = vadd.f32 %v1234_v18, %v1186_v17  ;;  %v1162_v30 = vadd.f32 %v1161_v26, %v3996_v6  ;;  %v1188_v0 = vmul.f32 %v3996_v6, %v3996_v6 }
 0x37e   :  { %v1215_v54 = vadd.f32 %v1214_v24, %v1187_v48 }
 0x37f   :  { %v1236_v45 = vadd.f32 %v1235_v42, %v1188_v0 }
 0x381   :  { %v4001_v58 = vpop.f32.mrb[24].mxu1 }
 0x382   :  { %v1142_v28 = vadd.f32 %v1141_v56, %v4001_v58  ;;  %v1189_v3 = vmul.f32 %v4001_v58, %v4001_v58  ;;  %v4006_v60 = vpop.f32.mrb[25].mxu1 }
 0x383   :  { %v1163_v59 = vadd.f32 %v1162_v30, %v4006_v60  ;;  %v1190_v8 = vmul.f32 %v4006_v60, %v4006_v60  ;;  %v4011_v53 = vpop.f32.mrb[26].mxu1 }
 0x384   :  { %v1216_v2 = vadd.f32 %v1215_v54, %v1189_v3  ;;  %v1143_v36 = vadd.f32 %v1142_v28, %v4011_v53  ;;  %v1191_v61 = vmul.f32 %v4011_v53, %v4011_v53  ;;  %v4016_v63 = vpop.f32.mrb[27].mxu1 }
 0x385   :  { %v1237_v7 = vadd.f32 %v1236_v45, %v1190_v8  ;;  %v1164_v9 = vadd.f32 %v1163_v59, %v4016_v63  ;;  %v1192_v33 = vmul.f32 %v4016_v63, %v4016_v63 }
 0x386   :  { %v1217_v11 = vadd.f32 %v1216_v2, %v1191_v61 }
 0x387   :  { %v1238_v10 = vadd.f32 %v1237_v7, %v1192_v33 }
 0x389   :  { %v4021_v12 = vpop.f32.mrb[28].mxu1 }
 0x38a   :  { %v1144_v15 = vadd.f32 %v1143_v36, %v4021_v12  ;;  %v1193_v27 = vmul.f32 %v4021_v12, %v4021_v12  ;;  %v4026_v31 = vpop.f32.mrb[29].mxu1 }
 0x38b   :  { %v1165_v62 = vadd.f32 %v1164_v9, %v4026_v31  ;;  %v1194_v19 = vmul.f32 %v4026_v31, %v4026_v31  ;;  %v4031_v41 = vpop.f32.mrb[30].mxu1 }
 0x38c   :  { %v1218_v14 = vadd.f32 %v1217_v11, %v1193_v27  ;;  %v1145_v49 = vadd.f32 %v1144_v15, %v4031_v41  ;;  %v1195_v51 = vmul.f32 %v4031_v41, %v4031_v41  ;;  %v4036_v4 = vpop.f32.mrb[31].mxu1 }
 0x38d   :  { %v1239_v57 = vadd.f32 %v1238_v10, %v1194_v19  ;;  %v1166_v25 = vadd.f32 %v1165_v62, %v4036_v4  ;;  %v1196_v13 = vmul.f32 %v4036_v4, %v4036_v4 }
 0x38e   :  { %v1219_v23 = vadd.f32 %v1218_v14, %v1195_v51 }
 0x38f   :  { %v1240_v34 = vadd.f32 %v1239_v57, %v1196_v13 }
 0x391   :  { %v4041_v37 = vpop.f32.mrb[32].mxu1 }
 0x392   :  { %v1146_v38 = vadd.f32 %v1145_v49, %v4041_v37  ;;  %v1197_v22 = vmul.f32 %v4041_v37, %v4041_v37  ;;  %v4046_v40 = vpop.f32.mrb[33].mxu1 }
 0x393   :  { %v1167_v52 = vadd.f32 %v1166_v25, %v4046_v40  ;;  %v1198_v47 = vmul.f32 %v4046_v40, %v4046_v40  ;;  %v4051_v20 = vpop.f32.mrb[34].mxu1 }
 0x394   :  { %v1220_v18 = vadd.f32 %v1219_v23, %v1197_v22  ;;  %v1147_v16 = vadd.f32 %v1146_v38, %v4051_v20  ;;  %v1199_v46 = vmul.f32 %v4051_v20, %v4051_v20  ;;  %v4056_v26 = vpop.f32.mrb[35].mxu1 }
 0x395   :  { %v1241_v17 = vadd.f32 %v1240_v34, %v1198_v47  ;;  %v1168_v24 = vadd.f32 %v1167_v52, %v4056_v26  ;;  %v1200_v56 = vmul.f32 %v4056_v26, %v4056_v26 }
 0x396   :  { %v1221_v48 = vadd.f32 %v1220_v18, %v1199_v46 }
 0x397   :  { %v1242_v42 = vadd.f32 %v1241_v17, %v1200_v56 }
 0x399   :  { %v4061_v30 = vpop.f32.mrb[36].mxu1 }
 0x39a   :  { %v1148_v0 = vadd.f32 %v1147_v16, %v4061_v30  ;;  %v1201_v54 = vmul.f32 %v4061_v30, %v4061_v30  ;;  %v4066_v45 = vpop.f32.mrb[37].mxu1 }
 0x39b   :  { %v1169_v28 = vadd.f32 %v1168_v24, %v4066_v45  ;;  %v1202_v3 = vmul.f32 %v4066_v45, %v4066_v45  ;;  %v4071_v59 = vpop.f32.mrb[38].mxu1 }
 0x39c   :  { %v1222_v8 = vadd.f32 %v1221_v48, %v1201_v54  ;;  %v1149_v2 = vadd.f32 %v1148_v0, %v4071_v59  ;;  %v1203_v36 = vmul.f32 %v4071_v59, %v4071_v59  ;;  %v4076_v61 = vpop.f32.mrb[39].mxu1 }
 0x39d   :  { %v1243_v7 = vadd.f32 %v1242_v42, %v1202_v3  ;;  %v1170_v9 = vadd.f32 %v1169_v28, %v4076_v61  ;;  %v1204_v33 = vmul.f32 %v4076_v61, %v4076_v61 }
 0x39e   :  { %v1223_v11 = vadd.f32 %v1222_v8, %v1203_v36 }
 0x39f   :  { %v1244_v10 = vadd.f32 %v1243_v7, %v1204_v33 }
 0x3a1   :  { %v4081_v15 = vpop.f32.mrb[40].mxu1 }
 0x3a2   :  { %v1150_v27 = vadd.f32 %v1149_v2, %v4081_v15  ;;  %v1205_v62 = vmul.f32 %v4081_v15, %v4081_v15  ;;  %v4086_v19 = vpop.f32.mrb[41].mxu1 }
 0x3a3   :  { %v1171_v14 = vadd.f32 %v1170_v9, %v4086_v19  ;;  %v1206_v49 = vmul.f32 %v4086_v19, %v4086_v19  ;;  %v4091_v51 = vpop.f32.mrb[42].mxu1 }
 0x3a4   :  { %v1224_v57 = vadd.f32 %v1223_v11, %v1205_v62  ;;  %v1151_v25 = vadd.f32 %v1150_v27, %v4091_v51  ;;  %v1207_v13 = vmul.f32 %v4091_v51, %v4091_v51  ;;  %v4096_v23 = vpop.f32.mrb[43].mxu1 }
 0x3a5   :  { %v1245_v34 = vadd.f32 %v1244_v10, %v1206_v49  ;;  %v1172_v38 = vadd.f32 %v1171_v14, %v4096_v23  ;;  %v1208_v22 = vmul.f32 %v4096_v23, %v4096_v23 }
 0x3a6   :  { %v1225_v52 = vadd.f32 %v1224_v57, %v1207_v13 }
 0x3a7   :  { %v1246_v47 = vadd.f32 %v1245_v34, %v1208_v22 }
 0x3a9   :  { %v4101_v18 = vpop.f32.mrb[44].mxu1 }
 0x3aa   :  { %v1152_v16 = vadd.f32 %v1151_v25, %v4101_v18  ;;  %v1209_v46 = vmul.f32 %v4101_v18, %v4101_v18  ;;  %v4106_v17 = vpop.f32.mrb[45].mxu1 }
 0x3ab   :  { %v1173_v24 = vadd.f32 %v1172_v38, %v4106_v17  ;;  %v1210_v56 = vmul.f32 %v4106_v17, %v4106_v17  ;;  %v4111_v48 = vpop.f32.mrb[46].mxu1 }
 0x3ac   :  { %v1226_v42 = vadd.f32 %v1225_v52, %v1209_v46  ;;  %v1153_v0 = vadd.f32 %v1152_v16, %v4111_v48  ;;  %v1211_v54 = vmul.f32 %v4111_v48, %v4111_v48  ;;  %v1136_v28 = vpop.f32.mrb[47].mxu1 }
 0x3ad   :  { %v1247_v3 = vadd.f32 %v1246_v47, %v1210_v56  ;;  %v1174_v8 = vadd.f32 %v1173_v24, %v1136_v28  ;;  %v1212_v2 = vmul.f32 %v1136_v28, %v1136_v28 }
 0x3ae   :  { %v1154_v36 = vrot.slane %v1153_v0, 4  ;;  %v1227_v7 = vadd.f32 %v1226_v42, %v1211_v54 }
 0x3af   :  { %v1175_v9 = vrot.slane %v1174_v8, 4  ;;  %v1248_v33 = vadd.f32 %v1247_v3, %v1212_v2 }
 0x3b0   :  { %v1155_v11 = vadd.f32 %v1154_v36, %v1153_v0  ;;  %v1228_v10 = vrot.slane %v1227_v7, 4 }
 0x3b1   :  { %v1176_v27 = vadd.f32 %v1175_v9, %v1174_v8  ;;  %v1249_v62 = vrot.slane %v1248_v33, 4 }
 0x3b2   :  { %v1156_v14 = vrot.slane %v1155_v11, 2  ;;  %v1229_v49 = vadd.f32 %v1228_v10, %v1227_v7 }
 0x3b3   :  { %v1177_v57 = vrot.slane %v1176_v27, 2  ;;  %v1250_v25 = vadd.f32 %v1249_v62, %v1248_v33 }
 0x3b4   :  { %v1157_v13 = vadd.f32 %v1156_v14, %v1155_v11  ;;  %v1230_v34 = vrot.slane %v1229_v49, 2 }
 0x3b5   :  { %v1178_v38 = vadd.f32 %v1177_v57, %v1176_v27  ;;  %v1251_v22 = vrot.slane %v1250_v25, 2 }
 0x3b6   :  { %v1158_v52 = vrot.slane %v1157_v13, 1  ;;  %v1231_v47 = vadd.f32 %v1230_v34, %v1229_v49 }
 0x3b7   :  { %v1179_v16 = vrot.slane %v1178_v38, 1  ;;  %v1252_v46 = vadd.f32 %v1251_v22, %v1250_v25 }
 0x3b8   :  { %v1159_v24 = vadd.f32 %v1158_v52, %v1157_v13  ;;  %v1232_v56 = vrot.slane %v1231_v47, 1  ;;  %v936_v13 = vld [vmem:[%s5032_s8] sm:$0x3] }
 0x3b9   :  { %v1180_v42 = vadd.f32 %v1179_v16, %v1178_v38  ;;  %v1253_v54 = vrot.slane %v1252_v46, 1 }
 0x3ba   :  { %v1233_v0 = vadd.f32 %v1232_v56, %v1231_v47  ;;  %v1255_v3 = vmul.f32 0.0078125, %v1159_v24 }
 0x3bb   :  { %v1254_v8 = vadd.f32 %v1253_v54, %v1252_v46  ;;  %v1256_v2 = vmul.f32 0.0078125, %v1180_v42 }
 0x3bc   :  { %v1257_v36 = vmul.f32 0.0078125, %v1233_v0  ;;  %v1259_v7 = vmul.f32 %v1255_v3, %v1255_v3 }
 0x3bd   :  { %v1258_v9 = vmul.f32 0.0078125, %v1254_v8  ;;  %v1260_v33 = vmul.f32 %v1256_v2, %v1256_v2 }
 0x3be   :  { %v1261_v11 = vsub.f32 %v1257_v36, %v1259_v7 }
 0x3bf   :  { %v1262_v10 = vsub.f32 %v1258_v9, %v1260_v33 }
 0x3c0   :  { %v1263_v27 = vadd.f32 1e-05, %v1261_v11 }
 0x3c1   :  { %v1264_v62 = vadd.f32 1e-05, %v1262_v10 }
 0x3c2   :  { %3171 = vrsqrt.f32 %v1263_v27 }
 0x3c3   :  { %3173 = vrsqrt.f32 %v1264_v62 }
 0x3cc   :  { %v3172_v14 = vpop.eup %3171 }
 0x3cd   :  { %v3174_v49 = vpop.eup %3173 }
 0x3ce   :  { %v1269_v57 = vcombine.low %v3172_v14, %v3174_v49 }
 0x3d0   :  { %v1276_v25 = vrot.slane %v1269_v57, %v3578_v32 }
 0x3d2   :  { %v1283_v34 = vrot.slane %v1276_v25, %v3578_v32 }
 0x3d4   :  { %v1285_v38 = vmul.f32 %v1283_v34, %v936_v13 }
 0x3d6   :  { %v1290_v22 = vrot.slane %v1285_v38, %v3585_v43  ;;  %v1294_v52 = vrot.slane %v1285_v38, %v3587_v44 }
 0x3d8   :  { %v1297_v47 = vmul.f32 %v1290_v22, %v1255_v3  ;;  %v1298_v16 = vmul.f32 %v1294_v52, %v1256_v2  ;;  %v1349_v46 = vmul.f32 %v1294_v52, %v1136_v28  ;;  %v1319_v24 = vmul.f32 %v1294_v52, %v3960_v5 }
 0x3d9   :  { %v1321_v56 = vmul.f32 %v1294_v52, %v3970_v39  ;;  %v1323_v42 = vmul.f32 %v1294_v52, %v3986_v55  ;;  %v1325_v54 = vmul.f32 %v1294_v52, %v3996_v6  ;;  %v1327_v0 = vmul.f32 %v1294_v52, %v4006_v60 }
 0x3da   :  { %v1301_v8 = vcombine.low %v1297_v47, %v1298_v16  ;;  %v1329_v36 = vmul.f32 %v1294_v52, %v4016_v63  ;;  %v1331_v7 = vmul.f32 %v1294_v52, %v4026_v31  ;;  %v1333_v9 = vmul.f32 %v1294_v52, %v4036_v4  ;;  %v937_v31 = vld [vmem:[%s5033_s9] sm:$0x3] }
 0x3db   :  { %v1335_v3 = vmul.f32 %v1294_v52, %v4046_v40  ;;  %v1337_v28 = vmul.f32 %v1294_v52, %v4056_v26  ;;  %v1339_v5 = vmul.f32 %v1294_v52, %v4066_v45  ;;  %v1341_v39 = vmul.f32 %v1294_v52, %v4076_v61 }
 0x3dc   :  { %v1308_v55 = vrot.slane %v1301_v8, %v3578_v32  ;;  %v1343_v6 = vmul.f32 %v1294_v52, %v4086_v19  ;;  %v4138_v60 = vmul.f32 %v1294_v52, %v4096_v23  ;;  %v4141_v63 = vmul.f32 %v1294_v52, %v4106_v17 }
 0x3dd   :  { %v4147_v4 = vmul.f32 %v1290_v22, %v3958_v35  ;;  %v4150_v40 = vmul.f32 %v1290_v22, %v3962_v29  ;;  %v4153_v26 = vmul.f32 %v1290_v22, %v3981_v21  ;;  %v4156_v45 = vmul.f32 %v1290_v22, %v3991_v50 }
 0x3de   :  { %v1315_v61 = vrot.slane %v1308_v55, %v3578_v32  ;;  %v4160_v19 = vmul.f32 %v1290_v22, %v4001_v58  ;;  %v4163_v23 = vmul.f32 %v1290_v22, %v4011_v53  ;;  %v4166_v35 = vmul.f32 %v1290_v22, %v4021_v12 }
 0x3df   :  { %v4169_v29 = vmul.f32 %v1290_v22, %v4031_v41  ;;  %v4172_v21 = vmul.f32 %v1290_v22, %v4041_v37  ;;  %v4175_v50 = vmul.f32 %v1290_v22, %v4051_v20  ;;  %v4178_v17 = vmul.f32 %v1290_v22, %v4061_v30 }
 0x3e0   :  { %v1317_v58 = vsub.f32 %v937_v31, %v1315_v61  ;;  %v4181_v2 = vmul.f32 %v1290_v22, %v4071_v59  ;;  %v4184_v53 = vmul.f32 %v1290_v22, %v4081_v15  ;;  %v4187_v12 = vmul.f32 %v1290_v22, %v4091_v51 }
 0x3e1   :  { %v4190_v41 = vmul.f32 %v1290_v22, %v4101_v18  ;;  %v4193_v37 = vmul.f32 %v1290_v22, %v4111_v48 }
 0x3e2   :  { %v1358_v20 = vrot.slane %v1317_v58, %v3587_v44  ;;  %v4197_v30 = vrot.slane %v1317_v58, %v3585_v43 }
 0x3e4   :  { %v4199_v33 = vadd.f32 %v1358_v20, %v1349_v46  ;;  %v1362_v59 = vadd.f32 %v1358_v20, %v1319_v24  ;;  %v1364_v11 = vadd.f32 %v1358_v20, %v1321_v56  ;;  %v1366_v15 = vadd.f32 %v1358_v20, %v1323_v42 }
 0x3e5   :  { %v1368_v10 = vadd.f32 %v1358_v20, %v1325_v54  ;;  %v1370_v27 = vadd.f32 %v1358_v20, %v1327_v0  ;;  %v1372_v51 = vadd.f32 %v1358_v20, %v1329_v36  ;;  %v1374_v62 = vadd.f32 %v1358_v20, %v1331_v7 }
 0x3e6   :  { %v1408_v18 = vmul.f32 0.01, %v4199_v33  ;;  %v1393_v14 = vmul.f32 0.01, %v1362_v59  ;;  %v1394_v49 = vmul.f32 0.01, %v1364_v11  ;;  %v1376_v48 = vadd.f32 %v1358_v20, %v1333_v9 }
 0x3e7   :  { %v1395_v57 = vmul.f32 0.01, %v1366_v15  ;;  %v1396_v25 = vmul.f32 0.01, %v1368_v10  ;;  %v1397_v13 = vmul.f32 0.01, %v1370_v27  ;;  %v1378_v34 = vadd.f32 %v1358_v20, %v1335_v3 }
 0x3e8   :  { %v1409_v38 = vmax.f32 %v1362_v59, %v1393_v14  ;;  %v1410_v22 = vmax.f32 %v1364_v11, %v1394_v49  ;;  %v1398_v52 = vmul.f32 0.01, %v1372_v51  ;;  %v1399_v47 = vmul.f32 0.01, %v1374_v62 }
 0x3e9   :  { %v1411_v16 = vmax.f32 %v1366_v15, %v1395_v57  ;;  %v1412_v46 = vmax.f32 %v1368_v10, %v1396_v25  ;;  %v1413_v24 = vmax.f32 %v1370_v27, %v1397_v13  ;;  %v1400_v56 = vmul.f32 0.01, %v1376_v48 }
 0x3ea   :  { %v1443_v42 = vpack.c.bf16 %v1410_v22, %v1409_v38  ;;  %v1414_v54 = vmax.f32 %v1372_v51, %v1398_v52  ;;  %v1415_v0 = vmax.f32 %v1374_v62, %v1399_v47  ;;  %v1380_v8 = vadd.f32 %v1358_v20, %v1337_v28  ;;  %v3134_v52 = vld [vmem:[%s5034_s13 + $0x30] ss:$8 sps:$4 sm:$0xff]   ;;  %v3136_v47 = vld [vmem:[%s5034_s13 + $0x34] ss:$8 sps:$4 sm:$0xff]  }
 0x3eb   :  { %v1444_v36 = vpack.c.bf16 %v1412_v46, %v1411_v16  ;;  %v1416_v7 = vmax.f32 %v1376_v48, %v1400_v56  ;;  %v1401_v55 = vmul.f32 0.01, %v1378_v34  ;;  %v1382_v9 = vadd.f32 %v1358_v20, %v1339_v5  ;;  %v3139_v16 = vld [vmem:[%s5034_s13 + $0x44] ss:$8 sps:$4 sm:$0xff]   ;;  %v3137_v46 = vld [vmem:[%s5034_s13 + $0x40] ss:$8 sps:$4 sm:$0xff]  }
 0x3ec   :  { %2979 = vmatprep.mubr.bf16.mxu0 %v1443_v42  ;;  %v1445_v31 = vpack.c.bf16 %v1414_v54, %v1413_v24  ;;  %v1402_v61 = vmul.f32 0.01, %v1380_v8  ;;  %v1384_v3 = vadd.f32 %v1358_v20, %v1341_v39  ;;  %v1386_v58 = vadd.f32 %v1358_v20, %v1343_v6  ;;  %v3142_v24 = vld [vmem:[%s5034_s13 + $0x54] ss:$8 sps:$4 sm:$0xff]   ;;  %v3140_v56 = vld [vmem:[%s5034_s13 + $0x50] ss:$8 sps:$4 sm:$0xff]  }
 0x3ed   :  { %2980 = vmatmul.mubr.bf16.vlgmr.msra.gmra.mrb[32].mxu0 %v1444_v36  ;;  %v1446_v59 = vpack.c.bf16 %v1416_v7, %v1415_v0  ;;  %v1417_v11 = vmax.f32 %v1378_v34, %v1401_v55  ;;  %v1403_v15 = vmul.f32 0.01, %v1382_v9  ;;  %v1388_v10 = vadd.f32 %v1358_v20, %v4138_v60  ;;  %v3145_v42 = vld [vmem:[%s5034_s13 + $0x64] ss:$8 sps:$4 sm:$0xff]   ;;  %v3143_v54 = vld [vmem:[%s5034_s13 + $0x60] ss:$8 sps:$4 sm:$0xff]  }
 0x3ee   :  { %2983 = vmatprep.mubr.bf16.mxu0 %v1445_v31  ;;  %v1418_v27 = vmax.f32 %v1380_v8, %v1402_v61  ;;  %v1404_v51 = vmul.f32 0.01, %v1384_v3  ;;  %v1405_v62 = vmul.f32 0.01, %v1386_v58  ;;  %v1390_v28 = vadd.f32 %v1358_v20, %v4141_v63  ;;  %v3148_v0 = vld [vmem:[%s5034_s13 + $0x74] ss:$8 sps:$4 sm:$0xff]  }
 0x3ef   :  { %v1419_v14 = vmax.f32 %v1382_v9, %v1403_v15  ;;  %v1406_v49 = vmul.f32 0.01, %v1388_v10  ;;  %v1424_v5 = vmax.f32 %v4199_v33, %v1408_v18  ;;  %v4207_v39 = vadd.f32 %v4197_v30, %v4147_v4  ;;  %v3146_v8 = vld [vmem:[%s5034_s13 + $0x70] ss:$8 sps:$4 sm:$0xff]  }
 0x3f0   :  { %v1447_v6 = vpack.c.bf16 %v1418_v27, %v1417_v11  ;;  %v1420_v48 = vmax.f32 %v1384_v3, %v1404_v51  ;;  %v1421_v57 = vmax.f32 %v1386_v58, %v1405_v62  ;;  %v1407_v25 = vmul.f32 0.01, %v1390_v28 }
 0x3f1   :  { %v1422_v13 = vmax.f32 %v1388_v10, %v1406_v49  ;;  %v4211_v60 = vadd.f32 %v4197_v30, %v4150_v40  ;;  %v4215_v63 = vadd.f32 %v4197_v30, %v4153_v26  ;;  %v4219_v20 = vadd.f32 %v4197_v30, %v4156_v45 }
 0x3f2   :  { %v1448_v33 = vpack.c.bf16 %v1420_v48, %v1419_v14  ;;  %v1423_v4 = vmax.f32 %v1390_v28, %v1407_v25  ;;  %v4223_v18 = vadd.f32 %v4197_v30, %v4160_v19  ;;  %v4227_v34 = vadd.f32 %v4197_v30, %v4163_v23 }
 0x3f3   :  { %v1449_v40 = vpack.c.bf16 %v1422_v13, %v1421_v57  ;;  %v4231_v38 = vadd.f32 %v4197_v30, %v4166_v35  ;;  %v4235_v26 = vadd.f32 %v4197_v30, %v4169_v29  ;;  %v4239_v45 = vadd.f32 %v4197_v30, %v4172_v21 }
 0x3f4   :  { %v1450_v22 = vpack.c.bf16 %v1424_v5, %v1423_v4  ;;  %v4243_v19 = vadd.f32 %v4197_v30, %v4175_v50  ;;  %v4247_v23 = vadd.f32 %v4197_v30, %v4178_v17  ;;  %v4251_v35 = vadd.f32 %v4197_v30, %v4181_v2  ;;  %v3127_v2 = vld [vmem:[%s5034_s13 + $0x4] ss:$8 sps:$4 sm:$0xff]  }
 0x3f5   :  { %2984 = vmatmul.mubr.bf16.gmra.mrb[36].mxu0 %v1446_v59  ;;  %v4255_v29 = vadd.f32 %v4197_v30, %v4184_v53  ;;  %v4259_v21 = vadd.f32 %v4197_v30, %v4187_v12  ;;  %v4263_v50 = vadd.f32 %v4197_v30, %v4190_v41  ;;  %v4267_v17 = vadd.f32 %v4197_v30, %v4193_v37  ;;  %v3125_v53 = vld [vmem:[%s5034_s13] ss:$8 sps:$4 sm:$0xff]   ;;  %v3130_v12 = vld [vmem:[%s5034_s13 + $0x14] ss:$8 sps:$4 sm:$0xff]   ;;  %v3128_v41 = vld [vmem:[%s5034_s13 + $0x10] ss:$8 sps:$4 sm:$0xff]  }
 0x3f6   :  { %2987 = vmatprep.mubr.bf16.mxu0 %v1447_v6  ;;  %1861 = vmatprep.subr.bf16.mxu0 %v3127_v2  ;;  %v3133_v37 = vld [vmem:[%s5034_s13 + $0x24] ss:$8 sps:$4 sm:$0xff]   ;;  %v3131_v30 = vld [vmem:[%s5034_s13 + $0x20] ss:$8 sps:$4 sm:$0xff]  }
 0x3f7   :  { %1862 = vmatpush1.bf16.msra.mxu0 %v3125_v53 }
 0x3f8   :  { %1863 = vmatprep.subr.bf16.mxu0 %v3130_v12 }
 0x3fb   :  { %1864 = vmatpush1.bf16.msra.mxu0 %v3128_v41 }
 0x3fc   :  { %1865 = vmatprep.subr.bf16.mxu0 %v3133_v37 }
 0x3fd   :  { %2988 = vmatmul.mubr.bf16.gmra.mrb[40].mxu0 %v1448_v33 }
 0x3fe   :  { %2991 = vmatprep.mubr.bf16.mxu0 %v1449_v40 }
 0x3ff   :  { %1866 = vmatpush1.bf16.msra.mxu0 %v3131_v30 }
 0x400   :  { %1867 = vmatprep.subr.bf16.mxu0 %v3136_v47 }
 0x403   :  { %1868 = vmatpush1.bf16.msra.mxu0 %v3134_v52 }
 0x404   :  { %1869 = vmatprep.subr.bf16.mxu0 %v3139_v16 }
 0x405   :  { %2992 = vmatmul.mubr.bf16.gmra.mrb[44].mxu0 %v1450_v22 }
 0x406   :  { %1893 = vmatprep.mubr.bf16.mxu0 %v3183_v1 }
 0x407   :  { %1870 = vmatpush1.bf16.msra.mxu0 %v3137_v46 }
 0x408   :  { %1871 = vmatprep.subr.bf16.mxu0 %v3142_v24 }
 0x40b   :  { %1872 = vmatpush1.bf16.msra.mxu0 %v3140_v56 }
 0x40c   :  { %1873 = vmatprep.subr.bf16.mxu0 %v3145_v42 }
 0x40f   :  { %1874 = vmatpush1.bf16.msra.mxu0 %v3143_v54 }
 0x410   :  { %1875 = vmatprep.subr.bf16.mxu0 %v3148_v0 }
 0x413   :  { %1876 = vmatpush1.bf16.msra.mxu0 %v3146_v8 }
 0x4c0   :  { %v4318_v36 = vpop.f32.mrb[32].mxu0 }
 0x4c1   :  { %v4320_v7 = vpop.f32.mrb[33].mxu0  ;;  %v1619_v58 = vmul.f32 %v4318_v36, %v4318_v36 }
 0x4c2   :  { %v4322_v55 = vpop.f32.mrb[34].mxu0  ;;  %v1617_v31 = vmul.f32 %v4320_v7, %v4320_v7 }
 0x4c3   :  { %v4324_v9 = vpop.f32.mrb[35].mxu0  ;;  %v1620_v15 = vmul.f32 %v4322_v55, %v4322_v55 }
 0x4c4   :  { %v1596_v61 = vadd.f32 %v4324_v9, %v4320_v7  ;;  %v1618_v3 = vmul.f32 %v4324_v9, %v4324_v9 }
 0x4c6   :  { %v1597_v59 = vadd.f32 %v4318_v36, %v1596_v61  ;;  %v1633_v11 = vadd.f32 %v1618_v3, %v1617_v31 }
 0x4c8   :  { %v1634_v10 = vadd.f32 %v1633_v11, %v1619_v58  ;;  %v4337_v27 = vpop.f32.mrb[36].mxu0  ;;  %v1598_v51 = vadd.f32 %v4322_v55, %v1597_v59 }
 0x4c9   :  { %v4340_v62 = vpop.f32.mrb[37].mxu0  ;;  %v1623_v13 = vmul.f32 %v4337_v27, %v4337_v27 }
 0x4ca   :  { %v1599_v28 = vadd.f32 %v1598_v51, %v4340_v62  ;;  %v1621_v14 = vmul.f32 %v4340_v62, %v4340_v62  ;;  %v1635_v49 = vadd.f32 %v1634_v10, %v1620_v15  ;;  %v4345_v5 = vpop.f32.mrb[38].mxu0 }
 0x4cb   :  { %v4347_v6 = vpop.f32.mrb[39].mxu0  ;;  %v1624_v40 = vmul.f32 %v4345_v5, %v4345_v5 }
 0x4cc   :  { %v1636_v48 = vadd.f32 %v1635_v49, %v1621_v14  ;;  %v1600_v57 = vadd.f32 %v1599_v28, %v4347_v6  ;;  %v1622_v25 = vmul.f32 %v4347_v6, %v4347_v6 }
 0x4ce   :  { %v1601_v33 = vadd.f32 %v4337_v27, %v1600_v57  ;;  %v1637_v4 = vadd.f32 %v1636_v48, %v1622_v25 }
 0x4d0   :  { %v1638_v22 = vadd.f32 %v1637_v4, %v1623_v13  ;;  %v4357_v2 = vpop.f32.mrb[40].mxu0  ;;  %v1602_v53 = vadd.f32 %v4345_v5, %v1601_v33 }
 0x4d1   :  { %v4360_v12 = vpop.f32.mrb[41].mxu0  ;;  %v1627_v56 = vmul.f32 %v4357_v2, %v4357_v2 }
 0x4d2   :  { %v1603_v41 = vadd.f32 %v1602_v53, %v4360_v12  ;;  %v1625_v37 = vmul.f32 %v4360_v12, %v4360_v12  ;;  %v1639_v30 = vadd.f32 %v1638_v22, %v1624_v40  ;;  %v4365_v52 = vpop.f32.mrb[42].mxu0 }
 0x4d3   :  { %v4367_v47 = vpop.f32.mrb[43].mxu0  ;;  %v1628_v0 = vmul.f32 %v4365_v52, %v4365_v52 }
 0x4d4   :  { %v1640_v16 = vadd.f32 %v1639_v30, %v1625_v37  ;;  %v1604_v46 = vadd.f32 %v1603_v41, %v4367_v47  ;;  %v1626_v24 = vmul.f32 %v4367_v47, %v4367_v47 }
 0x4d6   :  { %v1605_v42 = vadd.f32 %v4357_v2, %v1604_v46  ;;  %v1641_v54 = vadd.f32 %v1640_v16, %v1626_v24 }
 0x4d8   :  { %v1642_v8 = vadd.f32 %v1641_v54, %v1627_v56  ;;  %v4377_v31 = vpop.f32.mrb[44].mxu0  ;;  %v1606_v61 = vadd.f32 %v4365_v52, %v1605_v42 }
 0x4d9   :  { %v1581_v3 = vpop.f32.mrb[45].mxu0  ;;  %v1631_v49 = vmul.f32 %v4377_v31, %v4377_v31 }
 0x4da   :  { %v1607_v58 = vadd.f32 %v1606_v61, %v1581_v3  ;;  %v1629_v59 = vmul.f32 %v1581_v3, %v1581_v3  ;;  %v1643_v11 = vadd.f32 %v1642_v8, %v1628_v0  ;;  %v4380_v15 = vpop.f32.mrb[46].mxu0 }
 0x4db   :  { %v1584_v10 = vpop.f32.mrb[47].mxu0  ;;  %v1632_v25 = vmul.f32 %v4380_v15, %v4380_v15 }
 0x4dc   :  { %v1644_v51 = vadd.f32 %v1643_v11, %v1629_v59  ;;  %v1608_v28 = vadd.f32 %v1607_v58, %v1584_v10  ;;  %v1630_v14 = vmul.f32 %v1584_v10, %v1584_v10  ;;  %v1441_v11 = vld [vmem:[%s5035_s11] sm:$0x1] }
 0x4de   :  { %v1609_v48 = vadd.f32 %v4377_v31, %v1608_v28  ;;  %v1645_v57 = vadd.f32 %v1644_v51, %v1630_v14  ;;  %v1442_v14 = vld [vmem:[%s5036_s12] sm:$0x1] }
 0x4e0   :  { %v1610_v13 = vadd.f32 %v4380_v15, %v1609_v48  ;;  %v1646_v33 = vadd.f32 %v1645_v57, %v1631_v49 }
 0x4e2   :  { %v1611_v4 = vrot.slane %v1610_v13, 4  ;;  %v1647_v40 = vadd.f32 %v1646_v33, %v1632_v25 }
 0x4e4   :  { %v1612_v22 = vadd.f32 %v1611_v4, %v1610_v13  ;;  %v1648_v53 = vrot.slane %v1647_v40, 4 }
 0x4e6   :  { %v1613_v41 = vrot.slane %v1612_v22, 2  ;;  %v1649_v37 = vadd.f32 %v1648_v53, %v1647_v40 }
 0x4e8   :  { %v1614_v30 = vadd.f32 %v1613_v41, %v1612_v22  ;;  %v1650_v16 = vrot.slane %v1649_v37, 2 }
 0x4ea   :  { %v1615_v46 = vrot.slane %v1614_v30, 1  ;;  %v1651_v24 = vadd.f32 %v1650_v16, %v1649_v37 }
 0x4ec   :  { %v1616_v56 = vadd.f32 %v1615_v46, %v1614_v30  ;;  %v1652_v42 = vrot.slane %v1651_v24, 1 }
 0x4ee   :  { %v1653_v54 = vadd.f32 %v1652_v42, %v1651_v24  ;;  %v1654_v0 = vmul.f32 0.0078125, %v1616_v56 }
 0x4f0   :  { %v1655_v8 = vmul.f32 0.0078125, %v1653_v54  ;;  %v1656_v61 = vmul.f32 %v1654_v0, %v1654_v0 }
 0x4f2   :  { %v1657_v58 = vsub.f32 %v1655_v8, %v1656_v61 }
 0x4f4   :  { %v1658_v59 = vadd.f32 1e-05, %v1657_v58 }
 0x4f6   :  { %3175 = vrsqrt.f32 %v1658_v59 }
 0x500   :  { %v3176_v51 = vpop.eup %3175 }
 0x501   :  { %v1660_v28 = vmul.f32 %v3176_v51, %v1441_v11 }
 0x503   :  { %v1661_v49 = vmul.f32 %v1660_v28, %v1654_v0  ;;  %v4395_v48 = vrot.slane %v1660_v28, %v3585_v43 }
 0x505   :  { %v1662_v57 = vsub.f32 %v1442_v14, %v1661_v49  ;;  %v1682_v25 = vmul.f32 %v4395_v48, %v1584_v10  ;;  %v1669_v13 = vmul.f32 %v4395_v48, %v4320_v7  ;;  %v1670_v33 = vmul.f32 %v4395_v48, %v4324_v9 }
 0x506   :  { %v1671_v4 = vmul.f32 %v4318_v36, %v4395_v48  ;;  %v1672_v40 = vmul.f32 %v4322_v55, %v4395_v48  ;;  %v1673_v22 = vmul.f32 %v4395_v48, %v4340_v62  ;;  %v1674_v53 = vmul.f32 %v4395_v48, %v4347_v6 }
 0x507   :  { %v4411_v10 = vrot.slane %v1662_v57, %v3585_v43  ;;  %v1675_v7 = vmul.f32 %v4337_v27, %v4395_v48  ;;  %v1676_v9 = vmul.f32 %v4345_v5, %v4395_v48  ;;  %v1677_v36 = vmul.f32 %v4395_v48, %v4360_v12 }
 0x508   :  { %v1678_v55 = vmul.f32 %v4395_v48, %v4367_v47  ;;  %v1679_v62 = vmul.f32 %v4357_v2, %v4395_v48  ;;  %v1680_v6 = vmul.f32 %v4365_v52, %v4395_v48  ;;  %v1681_v41 = vmul.f32 %v4395_v48, %v1581_v3 }
 0x509   :  { %v1704_v37 = vadd.f32 %v4411_v10, %v1682_v25  ;;  %v1691_v27 = vadd.f32 %v4411_v10, %v1669_v13  ;;  %v1692_v5 = vadd.f32 %v4411_v10, %v1670_v33  ;;  %v1693_v30 = vadd.f32 %v4411_v10, %v1671_v4 }
 0x50a   :  { %v1694_v12 = vadd.f32 %v4411_v10, %v1672_v40  ;;  %v1695_v47 = vadd.f32 %v4411_v10, %v1673_v22  ;;  %v1696_v16 = vadd.f32 %v4411_v10, %v1674_v53  ;;  %v1697_v2 = vadd.f32 %v4411_v10, %v1675_v7 }
 0x50b   :  { %v1720_v46 = vmul.f32 0.01, %v1704_v37  ;;  %v1707_v52 = vmul.f32 0.01, %v1691_v27  ;;  %v1708_v24 = vmul.f32 0.01, %v1692_v5  ;;  %v1698_v3 = vadd.f32 %v4411_v10, %v1676_v9 }
 0x50c   :  { %v1709_v56 = vmul.f32 0.01, %v1693_v30  ;;  %v1710_v42 = vmul.f32 0.01, %v1694_v12  ;;  %v1711_v54 = vmul.f32 0.01, %v1695_v47  ;;  %v1699_v0 = vadd.f32 %v4411_v10, %v1677_v36 }
 0x50d   :  { %v1736_v8 = vmax.f32 %v1704_v37, %v1720_v46  ;;  %v1723_v61 = vmax.f32 %v1691_v27, %v1707_v52  ;;  %v1724_v58 = vmax.f32 %v1692_v5, %v1708_v24  ;;  %v1712_v59 = vmul.f32 0.01, %v1696_v16 }
 0x50e   :  { %v1725_v11 = vmax.f32 %v1693_v30, %v1709_v56  ;;  %v1726_v51 = vmax.f32 %v1694_v12, %v1710_v42  ;;  %v1727_v28 = vmax.f32 %v1695_v47, %v1711_v54  ;;  %v1713_v14 = vmul.f32 0.01, %v1697_v2 }
 0x50f   :  { %v1739_v49 = vadd.f32 %v1723_v61, %v4207_v39  ;;  %v1740_v57 = vadd.f32 %v1724_v58, %v4211_v60  ;;  %v1728_v25 = vmax.f32 %v1696_v16, %v1712_v59  ;;  %v1714_v13 = vmul.f32 0.01, %v1698_v3  ;;  %v3155_v59 = vld [vmem:[%s5037_s16 + $0x30] sm:$0xff]  }
 0x510   :  { %v1741_v33 = vadd.f32 %v1725_v11, %v4215_v63  ;;  %v1742_v4 = vadd.f32 %v1726_v51, %v4219_v20  ;;  %v1743_v40 = vadd.f32 %v1727_v28, %v4223_v18  ;;  %v1729_v22 = vmax.f32 %v1697_v2, %v1713_v14 }
 0x511   :  { %v1773_v53 = vpack.c.bf16 %v1740_v57, %v1739_v49  ;;  %v1744_v7 = vadd.f32 %v1728_v25, %v4227_v34  ;;  %v1730_v9 = vmax.f32 %v1698_v3, %v1714_v13  ;;  %v1700_v36 = vadd.f32 %v4411_v10, %v1678_v55  ;;  %v3156_v13 = vld [vmem:[%s5037_s16 + $0x38] sm:$0xff]  }
 0x512   :  { %v1774_v37 = vpack.c.bf16 %v1742_v4, %v1741_v33  ;;  %v1745_v39 = vadd.f32 %v1729_v22, %v4231_v38  ;;  %v1715_v27 = vmul.f32 0.01, %v1699_v0  ;;  %v1701_v60 = vadd.f32 %v4411_v10, %v1679_v62 }
 0x513   :  { %1894 = vmatmul.mubr.bf16.vlgmr.msra.gmra.mrb[48].mxu0 %v1773_v53  ;;  %v1775_v5 = vpack.c.bf16 %v1744_v7, %v1743_v40  ;;  %v1746_v63 = vadd.f32 %v1730_v9, %v4235_v26  ;;  %v1716_v20 = vmul.f32 0.01, %v1700_v36  ;;  %v1702_v18 = vadd.f32 %v4411_v10, %v1680_v6 }
 0x514   :  { %1903 = vmatprep.mubr.bf16.mxu0 %v3183_v1  ;;  %v1731_v30 = vmax.f32 %v1699_v0, %v1715_v27  ;;  %v1717_v34 = vmul.f32 0.01, %v1701_v60  ;;  %v1703_v12 = vadd.f32 %v4411_v10, %v1681_v41  ;;  %v1752_v55 = vadd.f32 %v1736_v8, %v4259_v21 }
 0x515   :  { %v1776_v47 = vpack.c.bf16 %v1746_v63, %v1745_v39  ;;  %v1732_v38 = vmax.f32 %v1700_v36, %v1716_v20  ;;  %v1718_v16 = vmul.f32 0.01, %v1702_v18  ;;  %v1683_v62 = vmul.f32 %v4377_v31, %v4395_v48 }
 0x516   :  { %v1747_v2 = vadd.f32 %v1731_v30, %v4239_v45  ;;  %v1733_v26 = vmax.f32 %v1701_v60, %v1717_v34  ;;  %v1719_v46 = vmul.f32 0.01, %v1703_v12  ;;  %v1684_v6 = vmul.f32 %v4380_v15, %v4395_v48 }
 0x517   :  { %v1748_v52 = vadd.f32 %v1732_v38, %v4243_v19  ;;  %v1734_v24 = vmax.f32 %v1702_v18, %v1718_v16  ;;  %v1705_v41 = vadd.f32 %v4411_v10, %v1683_v62 }
 0x518   :  { %v1749_v21 = vadd.f32 %v1733_v26, %v4247_v23  ;;  %v1735_v3 = vmax.f32 %v1703_v12, %v1719_v46  ;;  %v1706_v56 = vadd.f32 %v4411_v10, %v1684_v6  ;;  %v3154_v10 = vld [vmem:[%s5037_s16 + $0x28] sm:$0xff]  }
 0x519   :  { %v1777_v42 = vpack.c.bf16 %v1748_v52, %v1747_v2  ;;  %v1750_v31 = vadd.f32 %v1734_v24, %v4251_v35  ;;  %v1721_v54 = vmul.f32 0.01, %v1705_v41  ;;  %v3149_v35 = vld [vmem:[%s5037_s16] sm:$0xff]  }
 0x51a   :  { %v1751_v45 = vadd.f32 %v1735_v3, %v4255_v29  ;;  %v1722_v0 = vmul.f32 0.01, %v1706_v56  ;;  %2995 = vmatprep.subr.bf16.mxu1 %v3149_v35  ;;  %v3150_v29 = vld [vmem:[%s5037_s16 + $0x8] sm:$0xff]  }
 0x51b   :  { %1904 = vmatmul.mubr.bf16.gmra.mrb[52].mxu0 %v1774_v37  ;;  %v1778_v8 = vpack.c.bf16 %v1750_v31, %v1749_v21  ;;  %v1737_v15 = vmax.f32 %v1705_v41, %v1721_v54  ;;  %2996 = vmatpush3.bf16.msra.mxu1 %v3149_v35 }
 0x51c   :  { %1913 = vmatprep.mubr.bf16.mxu0 %v3183_v1  ;;  %v1779_v19 = vpack.c.bf16 %v1752_v55, %v1751_v45  ;;  %v1738_v48 = vmax.f32 %v1706_v56, %v1722_v0  ;;  %2997 = vmatprep.subr.bf16.mxu1 %v3150_v29 }
 0x51d   :  { %v1753_v61 = vadd.f32 %v1737_v15, %v4263_v50  ;;  %v3151_v50 = vld [vmem:[%s5037_s16 + $0x10] sm:$0xff]  }
 0x51e   :  { %v1754_v23 = vadd.f32 %v1738_v48, %v4267_v17  ;;  %v3153_v17 = vld [vmem:[%s5037_s16 + $0x20] sm:$0xff]  }
 0x51f   :  { %2998 = vmatpush3.bf16.msra.mxu1 %v3150_v29 }
 0x520   :  { %v1780_v58 = vpack.c.bf16 %v1754_v23, %v1753_v61  ;;  %2999 = vmatprep.subr.bf16.mxu1 %v3151_v50 }
 0x523   :  { %1914 = vmatmul.mubr.bf16.gmra.mrb[56].mxu0 %v1775_v5  ;;  %3000 = vmatpush3.bf16.msra.mxu1 %v3151_v50 }
 0x524   :  { %1923 = vmatprep.mubr.bf16.mxu0 %v3183_v1 }
 0x52b   :  { %1924 = vmatmul.mubr.bf16.gmra.mrb[60].mxu0 %v1776_v47 }
 0x52c   :  { %1933 = vmatprep.mubr.bf16.mxu0 %v3183_v1 }
 0x533   :  { %1934 = vmatmul.mubr.bf16.gmra.mrb[64].mxu0 %v1777_v42 }
 0x534   :  { %1943 = vmatprep.mubr.bf16.mxu0 %v3183_v1 }
 0x53b   :  { %1944 = vmatmul.mubr.bf16.gmra.mrb[68].mxu0 %v1778_v8 }
 0x53c   :  { %1953 = vmatprep.mubr.bf16.mxu0 %v3183_v1 }
 0x543   :  { %1954 = vmatmul.mubr.bf16.gmra.mrb[72].mxu0 %v1779_v19 }
 0x544   :  { %1963 = vmatprep.mubr.bf16.mxu0 %v3183_v1  ;;  %v3152_v1 = vld [vmem:[%s5037_s16 + $0x18] sm:$0xff]  }
 0x545   :  { %3001 = vmatprep.subr.bf16.mxu1 %v3152_v1 }
 0x546   :  { %3002 = vmatpush3.bf16.msra.mxu1 %v3152_v1 }
 0x547   :  { %3003 = vmatprep.subr.bf16.mxu1 %v3153_v17 }
 0x54a   :  { %3004 = vmatpush3.bf16.msra.mxu1 %v3153_v17 }
 0x54b   :  { %1964 = vmatmul.mubr.bf16.gmra.mrb[76].mxu0 %v1780_v58  ;;  %3005 = vmatprep.subr.bf16.mxu1 %v3154_v10 }
 0x54e   :  { %3006 = vmatpush3.bf16.msra.mxu1 %v3154_v10 }
 0x54f   :  { %3007 = vmatprep.subr.bf16.mxu1 %v3155_v59 }
 0x552   :  { %3008 = vmatpush3.bf16.msra.mxu1 %v3155_v59 }
 0x553   :  { %3009 = vmatprep.subr.bf16.mxu1 %v3156_v13 }
 0x556   :  { %3010 = vmatpush3.bf16.msra.mxu1 %v3156_v13 }
 0x5e6   :  { %v4490_v11 = vpop.f32.mrb[48].mxu0 }
 0x5e7   :  { %v4492_v51 = vpop.f32.mrb[49].mxu0  ;;  %v2016_v14 = vmul.f32 %v4490_v11, %v4490_v11 }
 0x5e8   :  { %v4494_v28 = vpop.f32.mrb[50].mxu0  ;;  %v2017_v33 = vmul.f32 %v4492_v51, %v4492_v51 }
 0x5e9   :  { %v1974_v49 = vadd.f32 %v4494_v28, %v4490_v11  ;;  %v2018_v57 = vmul.f32 %v4494_v28, %v4494_v28  ;;  %v4502_v25 = vpop.f32.mrb[51].mxu0 }
 0x5ea   :  { %v1995_v4 = vadd.f32 %v4502_v25, %v4492_v51  ;;  %v2019_v40 = vmul.f32 %v4502_v25, %v4502_v25 }
 0x5eb   :  { %v2048_v22 = vadd.f32 %v2018_v57, %v2016_v14 }
 0x5ec   :  { %v2069_v53 = vadd.f32 %v2019_v40, %v2017_v33 }
 0x5ee   :  { %v4513_v7 = vpop.f32.mrb[52].mxu0 }
 0x5ef   :  { %v1975_v9 = vadd.f32 %v1974_v49, %v4513_v7  ;;  %v2020_v36 = vmul.f32 %v4513_v7, %v4513_v7  ;;  %v4518_v37 = vpop.f32.mrb[53].mxu0 }
 0x5f0   :  { %v1996_v39 = vadd.f32 %v1995_v4, %v4518_v37  ;;  %v2021_v27 = vmul.f32 %v4518_v37, %v4518_v37  ;;  %v4523_v60 = vpop.f32.mrb[54].mxu0 }
 0x5f1   :  { %v2049_v5 = vadd.f32 %v2048_v22, %v2020_v36  ;;  %v1976_v63 = vadd.f32 %v1975_v9, %v4523_v60  ;;  %v2022_v20 = vmul.f32 %v4523_v60, %v4523_v60  ;;  %v4528_v18 = vpop.f32.mrb[55].mxu0 }
 0x5f2   :  { %v2070_v30 = vadd.f32 %v2069_v53, %v2021_v27  ;;  %v1997_v34 = vadd.f32 %v1996_v39, %v4528_v18  ;;  %v2023_v12 = vmul.f32 %v4528_v18, %v4528_v18 }
 0x5f3   :  { %v2050_v55 = vadd.f32 %v2049_v5, %v2022_v20 }
 0x5f4   :  { %v2071_v47 = vadd.f32 %v2070_v30, %v2023_v12 }
 0x5f6   :  { %v4533_v38 = vpop.f32.mrb[56].mxu0 }
 0x5f7   :  { %v1977_v16 = vadd.f32 %v1976_v63, %v4533_v38  ;;  %v2024_v62 = vmul.f32 %v4533_v38, %v4533_v38  ;;  %v4538_v2 = vpop.f32.mrb[57].mxu0 }
 0x5f8   :  { %v1998_v26 = vadd.f32 %v1997_v34, %v4538_v2  ;;  %v2025_v46 = vmul.f32 %v4538_v2, %v4538_v2  ;;  %v4543_v6 = vpop.f32.mrb[58].mxu0 }
 0x5f9   :  { %v2051_v52 = vadd.f32 %v2050_v55, %v2024_v62  ;;  %v1978_v24 = vadd.f32 %v1977_v16, %v4543_v6  ;;  %v2026_v41 = vmul.f32 %v4543_v6, %v4543_v6  ;;  %v4548_v21 = vpop.f32.mrb[59].mxu0 }
 0x5fa   :  { %v2072_v3 = vadd.f32 %v2071_v47, %v2025_v46  ;;  %v1999_v56 = vadd.f32 %v1998_v26, %v4548_v21  ;;  %v2027_v42 = vmul.f32 %v4548_v21, %v4548_v21 }
 0x5fb   :  { %v2052_v31 = vadd.f32 %v2051_v52, %v2026_v41 }
 0x5fc   :  { %v2073_v54 = vadd.f32 %v2072_v3, %v2027_v42 }
 0x5fe   :  { %v4553_v45 = vpop.f32.mrb[60].mxu0 }
 0x5ff   :  { %v1979_v0 = vadd.f32 %v1978_v24, %v4553_v45  ;;  %v2028_v8 = vmul.f32 %v4553_v45, %v4553_v45  ;;  %v4558_v15 = vpop.f32.mrb[61].mxu0 }
 0x600   :  { %v2000_v19 = vadd.f32 %v1999_v56, %v4558_v15  ;;  %v2029_v48 = vmul.f32 %v4558_v15, %v4558_v15  ;;  %v4563_v61 = vpop.f32.mrb[62].mxu0 }
 0x601   :  { %v2053_v23 = vadd.f32 %v2052_v31, %v2028_v8  ;;  %v1980_v58 = vadd.f32 %v1979_v0, %v4563_v61  ;;  %v2030_v35 = vmul.f32 %v4563_v61, %v4563_v61  ;;  %v4568_v29 = vpop.f32.mrb[63].mxu0 }
 0x602   :  { %v2074_v50 = vadd.f32 %v2073_v54, %v2029_v48  ;;  %v2001_v1 = vadd.f32 %v2000_v19, %v4568_v29  ;;  %v2031_v17 = vmul.f32 %v4568_v29, %v4568_v29 }
 0x603   :  { %v2054_v10 = vadd.f32 %v2053_v23, %v2030_v35 }
 0x604   :  { %v2075_v59 = vadd.f32 %v2074_v50, %v2031_v17 }
 0x606   :  { %v4573_v14 = vpop.f32.mrb[64].mxu0 }
 0x607   :  { %v1981_v49 = vadd.f32 %v1980_v58, %v4573_v14  ;;  %v2032_v57 = vmul.f32 %v4573_v14, %v4573_v14  ;;  %v4578_v13 = vpop.f32.mrb[65].mxu0 }
 0x608   :  { %v2002_v33 = vadd.f32 %v2001_v1, %v4578_v13  ;;  %v2033_v4 = vmul.f32 %v4578_v13, %v4578_v13  ;;  %v4583_v40 = vpop.f32.mrb[66].mxu0 }
 0x609   :  { %v2055_v22 = vadd.f32 %v2054_v10, %v2032_v57  ;;  %v1982_v53 = vadd.f32 %v1981_v49, %v4583_v40  ;;  %v2034_v9 = vmul.f32 %v4583_v40, %v4583_v40  ;;  %v4588_v36 = vpop.f32.mrb[67].mxu0 }
 0x60a   :  { %v2076_v39 = vadd.f32 %v2075_v59, %v2033_v4  ;;  %v2003_v27 = vadd.f32 %v2002_v33, %v4588_v36  ;;  %v2035_v5 = vmul.f32 %v4588_v36, %v4588_v36 }
 0x60b   :  { %v2056_v63 = vadd.f32 %v2055_v22, %v2034_v9 }
 0x60c   :  { %v2077_v20 = vadd.f32 %v2076_v39, %v2035_v5 }
 0x60e   :  { %v4593_v30 = vpop.f32.mrb[68].mxu0 }
 0x60f   :  { %v1983_v34 = vadd.f32 %v1982_v53, %v4593_v30  ;;  %v2036_v12 = vmul.f32 %v4593_v30, %v4593_v30  ;;  %v4598_v55 = vpop.f32.mrb[69].mxu0 }
 0x610   :  { %v2004_v47 = vadd.f32 %v2003_v27, %v4598_v55  ;;  %v2037_v16 = vmul.f32 %v4598_v55, %v4598_v55  ;;  %v4603_v62 = vpop.f32.mrb[70].mxu0 }
 0x611   :  { %v2057_v26 = vadd.f32 %v2056_v63, %v2036_v12  ;;  %v1984_v46 = vadd.f32 %v1983_v34, %v4603_v62  ;;  %v2038_v52 = vmul.f32 %v4603_v62, %v4603_v62  ;;  %v4608_v24 = vpop.f32.mrb[71].mxu0 }
 0x612   :  { %v2078_v41 = vadd.f32 %v2077_v20, %v2037_v16  ;;  %v2005_v3 = vadd.f32 %v2004_v47, %v4608_v24  ;;  %v2039_v56 = vmul.f32 %v4608_v24, %v4608_v24 }
 0x613   :  { %v2058_v42 = vadd.f32 %v2057_v26, %v2038_v52 }
 0x614   :  { %v2079_v31 = vadd.f32 %v2078_v41, %v2039_v56 }
 0x616   :  { %v4613_v54 = vpop.f32.mrb[72].mxu0 }
 0x617   :  { %v1985_v0 = vadd.f32 %v1984_v46, %v4613_v54  ;;  %v2040_v8 = vmul.f32 %v4613_v54, %v4613_v54  ;;  %v4618_v19 = vpop.f32.mrb[73].mxu0 }
 0x618   :  { %v2006_v48 = vadd.f32 %v2005_v3, %v4618_v19  ;;  %v2041_v23 = vmul.f32 %v4618_v19, %v4618_v19  ;;  %v4623_v58 = vpop.f32.mrb[74].mxu0 }
 0x619   :  { %v2059_v35 = vadd.f32 %v2058_v42, %v2040_v8  ;;  %v1986_v50 = vadd.f32 %v1985_v0, %v4623_v58  ;;  %v2042_v1 = vmul.f32 %v4623_v58, %v4623_v58  ;;  %v4628_v17 = vpop.f32.mrb[75].mxu0 }
 0x61a   :  { %v2080_v10 = vadd.f32 %v2079_v31, %v2041_v23  ;;  %v2007_v59 = vadd.f32 %v2006_v48, %v4628_v17  ;;  %v2043_v49 = vmul.f32 %v4628_v17, %v4628_v17 }
 0x61b   :  { %v2060_v57 = vadd.f32 %v2059_v35, %v2042_v1 }
 0x61c   :  { %v2081_v33 = vadd.f32 %v2080_v10, %v2043_v49 }
 0x61e   :  { %v4633_v4 = vpop.f32.mrb[76].mxu0 }
 0x61f   :  { %v1987_v22 = vadd.f32 %v1986_v50, %v4633_v4  ;;  %v2044_v53 = vmul.f32 %v4633_v4, %v4633_v4  ;;  %v4638_v9 = vpop.f32.mrb[77].mxu0 }
 0x620   :  { %v2008_v39 = vadd.f32 %v2007_v59, %v4638_v9  ;;  %v2045_v27 = vmul.f32 %v4638_v9, %v4638_v9  ;;  %v4643_v5 = vpop.f32.mrb[78].mxu0 }
 0x621   :  { %v2061_v63 = vadd.f32 %v2060_v57, %v2044_v53  ;;  %v1988_v20 = vadd.f32 %v1987_v22, %v4643_v5  ;;  %v2046_v34 = vmul.f32 %v4643_v5, %v4643_v5  ;;  %v1971_v12 = vpop.f32.mrb[79].mxu0 }
 0x622   :  { %v2082_v47 = vadd.f32 %v2081_v33, %v2045_v27  ;;  %v2009_v16 = vadd.f32 %v2008_v39, %v1971_v12  ;;  %v2047_v26 = vmul.f32 %v1971_v12, %v1971_v12 }
 0x623   :  { %v1989_v46 = vrot.slane %v1988_v20, 4  ;;  %v2062_v52 = vadd.f32 %v2061_v63, %v2046_v34 }
 0x624   :  { %v2010_v41 = vrot.slane %v2009_v16, 4  ;;  %v2083_v3 = vadd.f32 %v2082_v47, %v2047_v26 }
 0x625   :  { %v1990_v56 = vadd.f32 %v1989_v46, %v1988_v20  ;;  %v2063_v42 = vrot.slane %v2062_v52, 4 }
 0x626   :  { %v2011_v31 = vadd.f32 %v2010_v41, %v2009_v16  ;;  %v2084_v0 = vrot.slane %v2083_v3, 4 }
 0x627   :  { %v1991_v8 = vrot.slane %v1990_v56, 2  ;;  %v2064_v48 = vadd.f32 %v2063_v42, %v2062_v52 }
 0x628   :  { %v2012_v23 = vrot.slane %v2011_v31, 2  ;;  %v2085_v35 = vadd.f32 %v2084_v0, %v2083_v3 }
 0x629   :  { %v1992_v50 = vadd.f32 %v1991_v8, %v1990_v56  ;;  %v2065_v1 = vrot.slane %v2064_v48, 2 }
 0x62a   :  { %v2013_v10 = vadd.f32 %v2012_v23, %v2011_v31  ;;  %v2086_v59 = vrot.slane %v2085_v35, 2 }
 0x62b   :  { %v1993_v49 = vrot.slane %v1992_v50, 1  ;;  %v2066_v57 = vadd.f32 %v2065_v1, %v2064_v48 }
 0x62c   :  { %v2014_v33 = vrot.slane %v2013_v10, 1  ;;  %v2087_v22 = vadd.f32 %v2086_v59, %v2085_v35  ;;  %v1771_v35 = vld [vmem:[%s5038_s14] sm:$0x3] }
 0x62d   :  { %v1994_v53 = vadd.f32 %v1993_v49, %v1992_v50  ;;  %v2067_v39 = vrot.slane %v2066_v57, 1 }
 0x62e   :  { %v2015_v27 = vadd.f32 %v2014_v33, %v2013_v10  ;;  %v2088_v63 = vrot.slane %v2087_v22, 1 }
 0x62f   :  { %v2068_v20 = vadd.f32 %v2067_v39, %v2066_v57  ;;  %v2090_v34 = vmul.f32 0.0078125, %v1994_v53 }
 0x630   :  { %v2089_v47 = vadd.f32 %v2088_v63, %v2087_v22  ;;  %v2091_v16 = vmul.f32 0.0078125, %v2015_v27 }
 0x631   :  { %v2092_v26 = vmul.f32 0.0078125, %v2068_v20  ;;  %v2094_v46 = vmul.f32 %v2090_v34, %v2090_v34 }
 0x632   :  { %v2093_v52 = vmul.f32 0.0078125, %v2089_v47  ;;  %v2095_v41 = vmul.f32 %v2091_v16, %v2091_v16 }
 0x633   :  { %v2096_v3 = vsub.f32 %v2092_v26, %v2094_v46 }
 0x634   :  { %v2097_v56 = vsub.f32 %v2093_v52, %v2095_v41 }
 0x635   :  { %v2098_v42 = vadd.f32 1e-05, %v2096_v3 }
 0x636   :  { %v2099_v31 = vadd.f32 1e-05, %v2097_v56 }
 0x637   :  { %3177 = vrsqrt.f32 %v2098_v42 }
 0x638   :  { %3179 = vrsqrt.f32 %v2099_v31 }
 0x641   :  { %v3178_v0 = vpop.eup %3177 }
 0x642   :  { %v3180_v8 = vpop.eup %3179 }
 0x643   :  { %v2104_v48 = vcombine.low %v3178_v0, %v3180_v8 }
 0x645   :  { %v2111_v23 = vrot.slane %v2104_v48, %v3578_v32 }
 0x647   :  { %v2118_v50 = vrot.slane %v2111_v23, %v3578_v32 }
 0x649   :  { %v2120_v1 = vmul.f32 %v2118_v50, %v1771_v35 }
 0x64b   :  { %v2125_v10 = vrot.slane %v2120_v1, %v3585_v43  ;;  %v2129_v59 = vrot.slane %v2120_v1, %v3587_v44 }
 0x64d   :  { %v2132_v49 = vmul.f32 %v2125_v10, %v2090_v34  ;;  %v2133_v57 = vmul.f32 %v2129_v59, %v2091_v16  ;;  %v2184_v33 = vmul.f32 %v2129_v59, %v1971_v12  ;;  %v2154_v22 = vmul.f32 %v2129_v59, %v4492_v51 }
 0x64e   :  { %v2156_v53 = vmul.f32 %v2129_v59, %v4502_v25  ;;  %v2158_v39 = vmul.f32 %v2129_v59, %v4518_v37  ;;  %v2160_v27 = vmul.f32 %v2129_v59, %v4528_v18  ;;  %v2162_v63 = vmul.f32 %v2129_v59, %v4538_v2 }
 0x64f   :  { %v2136_v20 = vcombine.low %v2132_v49, %v2133_v57  ;;  %v2164_v47 = vmul.f32 %v2129_v59, %v4548_v21  ;;  %v2166_v26 = vmul.f32 %v2129_v59, %v4558_v15  ;;  %v2168_v46 = vmul.f32 %v2129_v59, %v4568_v29  ;;  %v1772_v15 = vld [vmem:[%s5039_s15] sm:$0x3] }
 0x650   :  { %v2170_v34 = vmul.f32 %v2129_v59, %v4578_v13  ;;  %v2172_v12 = vmul.f32 %v2129_v59, %v4588_v36  ;;  %v2174_v51 = vmul.f32 %v2129_v59, %v4598_v55  ;;  %v2176_v25 = vmul.f32 %v2129_v59, %v4608_v24 }
 0x651   :  { %v2143_v37 = vrot.slane %v2136_v20, %v3578_v32  ;;  %v4669_v18 = vmul.f32 %v2129_v59, %v4618_v19  ;;  %v4672_v2 = vmul.f32 %v2129_v59, %v4628_v17  ;;  %v4675_v21 = vmul.f32 %v2129_v59, %v4638_v9 }
 0x652   :  { %v4681_v29 = vmul.f32 %v2125_v10, %v4490_v11  ;;  %v4684_v13 = vmul.f32 %v2125_v10, %v4494_v28  ;;  %v4687_v36 = vmul.f32 %v2125_v10, %v4513_v7  ;;  %v4690_v55 = vmul.f32 %v2125_v10, %v4523_v60 }
 0x653   :  { %v2150_v24 = vrot.slane %v2143_v37, %v3578_v32  ;;  %v4694_v19 = vmul.f32 %v2125_v10, %v4533_v38  ;;  %v4697_v17 = vmul.f32 %v2125_v10, %v4543_v6  ;;  %v4700_v11 = vmul.f32 %v2125_v10, %v4553_v45 }
 0x654   :  { %v4703_v28 = vmul.f32 %v2125_v10, %v4563_v61  ;;  %v4706_v7 = vmul.f32 %v2125_v10, %v4573_v14  ;;  %v4709_v60 = vmul.f32 %v2125_v10, %v4583_v40  ;;  %v4712_v32 = vmul.f32 %v2125_v10, %v4593_v30 }
 0x655   :  { %v2152_v38 = vsub.f32 %v1772_v15, %v2150_v24  ;;  %v4715_v9 = vmul.f32 %v2125_v10, %v4603_v62  ;;  %v4718_v6 = vmul.f32 %v2125_v10, %v4613_v54  ;;  %v4721_v45 = vmul.f32 %v2125_v10, %v4623_v58 }
 0x656   :  { %v4724_v61 = vmul.f32 %v2125_v10, %v4633_v4  ;;  %v4727_v14 = vmul.f32 %v2125_v10, %v4643_v5 }
 0x657   :  { %v2193_v40 = vrot.slane %v2152_v38, %v3587_v44  ;;  %v4731_v30 = vrot.slane %v2152_v38, %v3585_v43 }
 0x659   :  { %v4733_v16 = vadd.f32 %v2193_v40, %v2184_v33  ;;  %v2197_v62 = vadd.f32 %v2193_v40, %v2154_v22  ;;  %v2199_v52 = vadd.f32 %v2193_v40, %v2156_v53  ;;  %v2201_v54 = vadd.f32 %v2193_v40, %v2158_v39 }
 0x65a   :  { %v2203_v41 = vadd.f32 %v2193_v40, %v2160_v27  ;;  %v2205_v3 = vadd.f32 %v2193_v40, %v2162_v63  ;;  %v2207_v58 = vadd.f32 %v2193_v40, %v2164_v47  ;;  %v2209_v56 = vadd.f32 %v2193_v40, %v2166_v26 }
 0x65b   :  { %v2243_v4 = vmul.f32 0.01, %v4733_v16  ;;  %v2228_v42 = vmul.f32 0.01, %v2197_v62  ;;  %v2229_v31 = vmul.f32 0.01, %v2199_v52  ;;  %v2211_v5 = vadd.f32 %v2193_v40, %v2168_v46 }
 0x65c   :  { %v2230_v0 = vmul.f32 0.01, %v2201_v54  ;;  %v2231_v8 = vmul.f32 0.01, %v2203_v41  ;;  %v2232_v44 = vmul.f32 0.01, %v2205_v3  ;;  %v2213_v48 = vadd.f32 %v2193_v40, %v2170_v34 }
 0x65d   :  { %v2259_v23 = vmax.f32 %v4733_v16, %v2243_v4  ;;  %v2244_v35 = vmax.f32 %v2197_v62, %v2228_v42  ;;  %v2245_v50 = vmax.f32 %v2199_v52, %v2229_v31  ;;  %v2233_v1 = vmul.f32 0.01, %v2207_v58 }
 0x65e   :  { %v2246_v10 = vmax.f32 %v2201_v54, %v2230_v0  ;;  %v2247_v59 = vmax.f32 %v2203_v41, %v2231_v8  ;;  %v2248_v49 = vmax.f32 %v2205_v3, %v2232_v44  ;;  %v2234_v57 = vmul.f32 0.01, %v2209_v56 }
 0x65f   :  { %v2278_v33 = vpack.c.bf16 %v2245_v50, %v2244_v35  ;;  %v2249_v22 = vmax.f32 %v2207_v58, %v2233_v1  ;;  %v2235_v53 = vmul.f32 0.01, %v2211_v5  ;;  %v2215_v39 = vadd.f32 %v2193_v40, %v2172_v12 }
 0x660   :  { %v2279_v27 = vpack.c.bf16 %v2247_v59, %v2246_v10  ;;  %v2250_v63 = vmax.f32 %v2209_v56, %v2234_v57  ;;  %v2236_v20 = vmul.f32 0.01, %v2213_v48  ;;  %v2217_v47 = vadd.f32 %v2193_v40, %v2174_v51 }
 0x661   :  { %3011 = vmatprep.mubr.bf16.mxu1 %v2278_v33  ;;  %v2280_v26 = vpack.c.bf16 %v2249_v22, %v2248_v49  ;;  %v2251_v46 = vmax.f32 %v2211_v5, %v2235_v53  ;;  %v2237_v34 = vmul.f32 0.01, %v2215_v39  ;;  %v2219_v37 = vadd.f32 %v2193_v40, %v2176_v25 }
 0x662   :  { %3012 = vmatmul.mubr.bf16.vlgmr.msra.gmra.mrb[48].mxu1 %v2279_v27  ;;  %v2252_v15 = vmax.f32 %v2213_v48, %v2236_v20  ;;  %v2238_v24 = vmul.f32 0.01, %v2217_v47  ;;  %v2221_v38 = vadd.f32 %v2193_v40, %v4669_v18  ;;  %v2223_v16 = vadd.f32 %v2193_v40, %v4672_v2  ;;  %v3163_v48 = vld [vmem:[%s5040_s19 + $0x30] sm:$0xff]  }
 0x663   :  { %3015 = vmatprep.mubr.bf16.mxu1 %v2280_v26  ;;  %v2281_v62 = vpack.c.bf16 %v2251_v46, %v2250_v63  ;;  %v2253_v52 = vmax.f32 %v2215_v39, %v2237_v34  ;;  %v2239_v12 = vmul.f32 0.01, %v2219_v37  ;;  %v2225_v54 = vadd.f32 %v2193_v40, %v4675_v21 }
 0x664   :  { %v2254_v41 = vmax.f32 %v2217_v47, %v2238_v24  ;;  %v2240_v51 = vmul.f32 0.01, %v2221_v38  ;;  %v2241_v3 = vmul.f32 0.01, %v2223_v16  ;;  %v4742_v58 = vadd.f32 %v4731_v30, %v4681_v29 }
 0x665   :  { %v2282_v25 = vpack.c.bf16 %v2253_v52, %v2252_v15  ;;  %v2255_v56 = vmax.f32 %v2219_v37, %v2239_v12  ;;  %v2242_v4 = vmul.f32 0.01, %v2225_v54  ;;  %v4746_v18 = vadd.f32 %v4731_v30, %v4684_v13 }
 0x666   :  { %v2256_v2 = vmax.f32 %v2221_v38, %v2240_v51  ;;  %v2257_v42 = vmax.f32 %v2223_v16, %v2241_v3  ;;  %v4750_v31 = vadd.f32 %v4731_v30, %v4687_v36  ;;  %v4754_v21 = vadd.f32 %v4731_v30, %v4690_v55 }
 0x667   :  { %v2283_v40 = vpack.c.bf16 %v2255_v56, %v2254_v41  ;;  %v2258_v29 = vmax.f32 %v2225_v54, %v2242_v4  ;;  %v4758_v5 = vadd.f32 %v4731_v30, %v4694_v19  ;;  %v4762_v13 = vadd.f32 %v4731_v30, %v4697_v17 }
 0x668   :  { %v2284_v0 = vpack.c.bf16 %v2257_v42, %v2256_v2  ;;  %v4766_v8 = vadd.f32 %v4731_v30, %v4700_v11  ;;  %v4770_v36 = vadd.f32 %v4731_v30, %v4703_v28  ;;  %v4774_v55 = vadd.f32 %v4731_v30, %v4706_v7 }
 0x669   :  { %v2285_v44 = vpack.c.bf16 %v2259_v23, %v2258_v29  ;;  %v4778_v19 = vadd.f32 %v4731_v30, %v4709_v60  ;;  %v4782_v17 = vadd.f32 %v4731_v30, %v4712_v32  ;;  %v4786_v11 = vadd.f32 %v4731_v30, %v4715_v9  ;;  %v3157_v9 = vld [vmem:[%s5040_s19] sm:$0xff]   ;;  %v3164_v23 = vld [vmem:[%s5040_s19 + $0x38] sm:$0xff]  }
 0x66a   :  { %3016 = vmatmul.mubr.bf16.gmra.mrb[52].mxu1 %v2281_v62  ;;  %v4790_v28 = vadd.f32 %v4731_v30, %v4718_v6  ;;  %v4794_v7 = vadd.f32 %v4731_v30, %v4721_v45  ;;  %v4798_v60 = vadd.f32 %v4731_v30, %v4724_v61  ;;  %v4802_v32 = vadd.f32 %v4731_v30, %v4727_v14  ;;  %v3158_v6 = vld [vmem:[%s5040_s19 + $0x8] sm:$0xff]   ;;  %v3159_v45 = vld [vmem:[%s5040_s19 + $0x10] sm:$0xff]   ;;  %v3160_v61 = vld [vmem:[%s5040_s19 + $0x18] sm:$0xff]  }
 0x66b   :  { %3019 = vmatprep.mubr.bf16.mxu1 %v2282_v25  ;;  %3027 = vmatprep.subr.bf16.mxu1 %v3157_v9  ;;  %v3161_v14 = vld [vmem:[%s5040_s19 + $0x20] sm:$0xff]   ;;  %v3162_v30 = vld [vmem:[%s5040_s19 + $0x28] sm:$0xff]  }
 0x66c   :  { %3028 = vmatpush3.bf16.msra.mxu1 %v3157_v9 }
 0x66d   :  { %3029 = vmatprep.subr.bf16.mxu1 %v3158_v6 }
 0x670   :  { %3030 = vmatpush3.bf16.msra.mxu1 %v3158_v6 }
 0x671   :  { %3031 = vmatprep.subr.bf16.mxu1 %v3159_v45 }
 0x672   :  { %3020 = vmatmul.mubr.bf16.gmra.mrb[56].mxu1 %v2283_v40 }
 0x673   :  { %3023 = vmatprep.mubr.bf16.mxu1 %v2284_v0 }
 0x674   :  { %3032 = vmatpush3.bf16.msra.mxu1 %v3159_v45 }
 0x675   :  { %3033 = vmatprep.subr.bf16.mxu1 %v3160_v61 }
 0x678   :  { %3034 = vmatpush3.bf16.msra.mxu1 %v3160_v61 }
 0x679   :  { %3035 = vmatprep.subr.bf16.mxu1 %v3161_v14 }
 0x67a   :  { %3024 = vmatmul.mubr.bf16.gmra.mrb[60].mxu1 %v2285_v44 }
 0x67c   :  { %3036 = vmatpush3.bf16.msra.mxu1 %v3161_v14 }
 0x67d   :  { %3037 = vmatprep.subr.bf16.mxu1 %v3162_v30 }
 0x680   :  { %3038 = vmatpush3.bf16.msra.mxu1 %v3162_v30 }
 0x681   :  { %3039 = vmatprep.subr.bf16.mxu1 %v3163_v48 }
 0x684   :  { %3040 = vmatpush3.bf16.msra.mxu1 %v3163_v48 }
 0x685   :  { %3041 = vmatprep.subr.bf16.mxu1 %v3164_v23 }
 0x688   :  { %3042 = vmatpush3.bf16.msra.mxu1 %v3164_v23 }
 0x735   :  { %v4828_v35 = vpop.f32.mrb[48].mxu1 }
 0x736   :  { %v4830_v50 = vpop.f32.mrb[49].mxu1  ;;  %v2454_v33 = vmul.f32 %v4828_v35, %v4828_v35 }
 0x737   :  { %v4832_v1 = vpop.f32.mrb[50].mxu1  ;;  %v2452_v59 = vmul.f32 %v4830_v50, %v4830_v50 }
 0x738   :  { %v4834_v10 = vpop.f32.mrb[51].mxu1  ;;  %v2455_v39 = vmul.f32 %v4832_v1, %v4832_v1 }
 0x739   :  { %v2431_v49 = vadd.f32 %v4834_v10, %v4830_v50  ;;  %v2453_v57 = vmul.f32 %v4834_v10, %v4834_v10 }
 0x73b   :  { %v2432_v22 = vadd.f32 %v4828_v35, %v2431_v49  ;;  %v2468_v53 = vadd.f32 %v2453_v57, %v2452_v59 }
 0x73d   :  { %v2469_v27 = vadd.f32 %v2468_v53, %v2454_v33  ;;  %v4847_v63 = vpop.f32.mrb[52].mxu1  ;;  %v2433_v20 = vadd.f32 %v4832_v1, %v2432_v22 }
 0x73e   :  { %v4850_v47 = vpop.f32.mrb[53].mxu1  ;;  %v2458_v62 = vmul.f32 %v4847_v63, %v4847_v63 }
 0x73f   :  { %v2434_v26 = vadd.f32 %v2433_v20, %v4850_v47  ;;  %v2456_v46 = vmul.f32 %v4850_v47, %v4850_v47  ;;  %v2470_v34 = vadd.f32 %v2469_v27, %v2455_v39  ;;  %v4855_v37 = vpop.f32.mrb[54].mxu1 }
 0x740   :  { %v4857_v15 = vpop.f32.mrb[55].mxu1  ;;  %v2459_v54 = vmul.f32 %v4855_v37, %v4855_v37 }
 0x741   :  { %v2471_v24 = vadd.f32 %v2470_v34, %v2456_v46  ;;  %v2435_v38 = vadd.f32 %v2434_v26, %v4857_v15  ;;  %v2457_v16 = vmul.f32 %v4857_v15, %v4857_v15 }
 0x743   :  { %v2436_v52 = vadd.f32 %v4847_v63, %v2435_v38  ;;  %v2472_v12 = vadd.f32 %v2471_v24, %v2457_v16 }
 0x745   :  { %v2473_v41 = vadd.f32 %v2472_v12, %v2458_v62  ;;  %v4867_v51 = vpop.f32.mrb[56].mxu1  ;;  %v2437_v3 = vadd.f32 %v4855_v37, %v2436_v52 }
 0x746   :  { %v4870_v25 = vpop.f32.mrb[57].mxu1  ;;  %v2462_v9 = vmul.f32 %v4867_v51, %v4867_v51 }
 0x747   :  { %v2438_v56 = vadd.f32 %v2437_v3, %v4870_v25  ;;  %v2460_v4 = vmul.f32 %v4870_v25, %v4870_v25  ;;  %v2474_v2 = vadd.f32 %v2473_v41, %v2459_v54  ;;  %v4875_v42 = vpop.f32.mrb[58].mxu1 }
 0x748   :  { %v4877_v40 = vpop.f32.mrb[59].mxu1  ;;  %v2463_v61 = vmul.f32 %v4875_v42, %v4875_v42 }
 0x749   :  { %v2475_v29 = vadd.f32 %v2474_v2, %v2460_v4  ;;  %v2439_v0 = vadd.f32 %v2438_v56, %v4877_v40  ;;  %v2461_v44 = vmul.f32 %v4877_v40, %v4877_v40 }
 0x74b   :  { %v2440_v6 = vadd.f32 %v4867_v51, %v2439_v0  ;;  %v2476_v45 = vadd.f32 %v2475_v29, %v2461_v44 }
 0x74d   :  { %v2477_v14 = vadd.f32 %v2476_v45, %v2462_v9  ;;  %v4887_v30 = vpop.f32.mrb[60].mxu1  ;;  %v2441_v48 = vadd.f32 %v4875_v42, %v2440_v6 }
 0x74e   :  { %v2416_v23 = vpop.f32.mrb[61].mxu1  ;;  %v2466_v20 = vmul.f32 %v4887_v30, %v4887_v30 }
 0x74f   :  { %v2442_v59 = vadd.f32 %v2441_v48, %v2416_v23  ;;  %v2464_v49 = vmul.f32 %v2416_v23, %v2416_v23  ;;  %v2478_v57 = vadd.f32 %v2477_v14, %v2463_v61  ;;  %v4890_v33 = vpop.f32.mrb[62].mxu1  ;;  %v2276_v48 = vld [vmem:[%s5041_s17] sm:$0x1] }
 0x750   :  { %v2419_v22 = vpop.f32.mrb[63].mxu1  ;;  %v2467_v34 = vmul.f32 %v4890_v33, %v4890_v33 }
 0x751   :  { %v2479_v53 = vadd.f32 %v2478_v57, %v2464_v49  ;;  %v2443_v39 = vadd.f32 %v2442_v59, %v2419_v22  ;;  %v2465_v27 = vmul.f32 %v2419_v22, %v2419_v22  ;;  %v2277_v57 = vld [vmem:[%s5042_s18] sm:$0x1] }
 0x753   :  { %v2444_v26 = vadd.f32 %v4887_v30, %v2443_v39  ;;  %v2480_v46 = vadd.f32 %v2479_v53, %v2465_v27 }
 0x755   :  { %v2445_v24 = vadd.f32 %v4890_v33, %v2444_v26  ;;  %v2481_v38 = vadd.f32 %v2480_v46, %v2466_v20 }
 0x757   :  { %v2446_v16 = vrot.slane %v2445_v24, 4  ;;  %v2482_v62 = vadd.f32 %v2481_v38, %v2467_v34 }
 0x759   :  { %v2447_v52 = vadd.f32 %v2446_v16, %v2445_v24  ;;  %v2483_v12 = vrot.slane %v2482_v62, 4 }
 0x75b   :  { %v2448_v54 = vrot.slane %v2447_v52, 2  ;;  %v2484_v41 = vadd.f32 %v2483_v12, %v2482_v62 }
 0x75d   :  { %v2449_v3 = vadd.f32 %v2448_v54, %v2447_v52  ;;  %v2485_v56 = vrot.slane %v2484_v41, 2 }
 0x75f   :  { %v2450_v4 = vrot.slane %v2449_v3, 1  ;;  %v2486_v2 = vadd.f32 %v2485_v56, %v2484_v41 }
 0x761   :  { %v2451_v29 = vadd.f32 %v2450_v4, %v2449_v3  ;;  %v2487_v0 = vrot.slane %v2486_v2, 1 }
 0x763   :  { %v2488_v44 = vadd.f32 %v2487_v0, %v2486_v2  ;;  %v2489_v9 = vmul.f32 0.0078125, %v2451_v29 }
 0x765   :  { %v2490_v6 = vmul.f32 0.0078125, %v2488_v44  ;;  %v2491_v45 = vmul.f32 %v2489_v9, %v2489_v9 }
 0x767   :  { %v2492_v61 = vsub.f32 %v2490_v6, %v2491_v45 }
 0x769   :  { %v2493_v14 = vadd.f32 1e-05, %v2492_v61 }
 0x76b   :  { %3181 = vrsqrt.f32 %v2493_v14 }
 0x775   :  { %v3182_v59 = vpop.eup %3181 }
 0x776   :  { %v2495_v49 = vmul.f32 %v3182_v59, %v2276_v48 }
 0x778   :  { %v2496_v53 = vmul.f32 %v2495_v49, %v2489_v9  ;;  %v4905_v39 = vrot.slane %v2495_v49, %v3585_v43 }
 0x77a   :  { %v2497_v27 = vsub.f32 %v2277_v57, %v2496_v53  ;;  %v2517_v20 = vmul.f32 %v4905_v39, %v2419_v22  ;;  %v2504_v26 = vmul.f32 %v4905_v39, %v4830_v50  ;;  %v2505_v46 = vmul.f32 %v4905_v39, %v4834_v10 }
 0x77b   :  { %v2506_v34 = vmul.f32 %v4828_v35, %v4905_v39  ;;  %v2507_v24 = vmul.f32 %v4832_v1, %v4905_v39  ;;  %v2508_v38 = vmul.f32 %v4905_v39, %v4850_v47  ;;  %v2509_v16 = vmul.f32 %v4905_v39, %v4857_v15 }
 0x77c   :  { %v4921_v22 = vrot.slane %v2497_v27, %v3585_v43  ;;  %v2510_v50 = vmul.f32 %v4847_v63, %v4905_v39  ;;  %v2511_v10 = vmul.f32 %v4855_v37, %v4905_v39  ;;  %v2512_v35 = vmul.f32 %v4905_v39, %v4870_v25 }
 0x77d   :  { %v2513_v1 = vmul.f32 %v4905_v39, %v4877_v40  ;;  %v2514_v47 = vmul.f32 %v4867_v51, %v4905_v39  ;;  %v2515_v15 = vmul.f32 %v4875_v42, %v4905_v39  ;;  %v2516_v43 = vmul.f32 %v4905_v39, %v2416_v23 }
 0x77e   :  { %v2539_v62 = vadd.f32 %v4921_v22, %v2517_v20  ;;  %v2526_v63 = vadd.f32 %v4921_v22, %v2504_v26  ;;  %v2527_v37 = vadd.f32 %v4921_v22, %v2505_v46  ;;  %v2528_v52 = vadd.f32 %v4921_v22, %v2506_v34 }
 0x77f   :  { %v2529_v25 = vadd.f32 %v4921_v22, %v2507_v24  ;;  %v2530_v40 = vadd.f32 %v4921_v22, %v2508_v38  ;;  %v2531_v12 = vadd.f32 %v4921_v22, %v2509_v16  ;;  %v2532_v51 = vadd.f32 %v4921_v22, %v2510_v50 }
 0x780   :  { %v2555_v54 = vmul.f32 0.01, %v2539_v62  ;;  %v2542_v42 = vmul.f32 0.01, %v2526_v63  ;;  %v2543_v41 = vmul.f32 0.01, %v2527_v37  ;;  %v2533_v23 = vadd.f32 %v4921_v22, %v2511_v10 }
 0x781   :  { %v2544_v3 = vmul.f32 0.01, %v2528_v52  ;;  %v2545_v56 = vmul.f32 0.01, %v2529_v25  ;;  %v2546_v4 = vmul.f32 0.01, %v2530_v40  ;;  %v2534_v2 = vadd.f32 %v4921_v22, %v2512_v35 }
 0x782   :  { %v2571_v29 = vmax.f32 %v2539_v62, %v2555_v54  ;;  %v2558_v0 = vmax.f32 %v2526_v63, %v2542_v42  ;;  %v2559_v44 = vmax.f32 %v2527_v37, %v2543_v41  ;;  %v2547_v9 = vmul.f32 0.01, %v2531_v12 }
 0x783   :  { %v2560_v6 = vmax.f32 %v2528_v52, %v2544_v3  ;;  %v2561_v45 = vmax.f32 %v2529_v25, %v2545_v56  ;;  %v2562_v61 = vmax.f32 %v2530_v40, %v2546_v4  ;;  %v2548_v14 = vmul.f32 0.01, %v2532_v51 }
 0x784   :  { %v2574_v48 = vadd.f32 %v2558_v0, %v4742_v58  ;;  %v2575_v59 = vadd.f32 %v2559_v44, %v4746_v18  ;;  %v2563_v49 = vmax.f32 %v2531_v12, %v2547_v9  ;;  %v2549_v57 = vmul.f32 0.01, %v2533_v23 }
 0x785   :  { %v2576_v53 = vadd.f32 %v2560_v6, %v4750_v31  ;;  %v2577_v27 = vadd.f32 %v2561_v45, %v4754_v21  ;;  %v2578_v20 = vadd.f32 %v2562_v61, %v4758_v5  ;;  %v2564_v26 = vmax.f32 %v2532_v51, %v2548_v14 }
 0x786   :  { %v2607_v46 = vpack.c.bf16 %v2575_v59, %v2574_v48  ;;  %v2579_v34 = vadd.f32 %v2563_v49, %v4762_v13  ;;  %v2565_v24 = vmax.f32 %v2533_v23, %v2549_v57  ;;  %v2535_v38 = vadd.f32 %v4921_v22, %v2513_v1 }
 0x787   :  { %v2608_v16 = vpack.c.bf16 %v2577_v27, %v2576_v53  ;;  %v2580_v58 = vadd.f32 %v2564_v26, %v4766_v8  ;;  %v2550_v50 = vmul.f32 0.01, %v2534_v2  ;;  %v2536_v18 = vadd.f32 %v4921_v22, %v2514_v47 }
 0x788   :  { %3043 = vmatprep.mubr.bf16.mxu1 %v2607_v46  ;;  %v2609_v10 = vpack.c.bf16 %v2579_v34, %v2578_v20  ;;  %v2581_v31 = vadd.f32 %v2565_v24, %v4770_v36  ;;  %v2551_v21 = vmul.f32 0.01, %v2535_v38  ;;  %v2537_v5 = vadd.f32 %v4921_v22, %v2515_v15 }
 0x789   :  { %3044 = vmatmul.mubr.bf16.vlgmr.msra.gmra.mrb[64].mxu1 %v2608_v16  ;;  %v2566_v35 = vmax.f32 %v2534_v2, %v2550_v50  ;;  %v2552_v62 = vmul.f32 0.01, %v2536_v18  ;;  %v2538_v13 = vadd.f32 %v4921_v22, %v2516_v43  ;;  %v2587_v1 = vadd.f32 %v2571_v29, %v4794_v7 }
 0x78a   :  { %3047 = vmatprep.mubr.bf16.mxu1 %v2609_v10  ;;  %v2610_v63 = vpack.c.bf16 %v2581_v31, %v2580_v58  ;;  %v2567_v8 = vmax.f32 %v2535_v38, %v2551_v21  ;;  %v2553_v37 = vmul.f32 0.01, %v2537_v5  ;;  %v2518_v47 = vmul.f32 %v4887_v30, %v4905_v39 }
 0x78b   :  { %v2582_v52 = vadd.f32 %v2566_v35, %v4774_v55  ;;  %v2568_v36 = vmax.f32 %v2536_v18, %v2552_v62  ;;  %v2554_v25 = vmul.f32 0.01, %v2538_v13  ;;  %v2519_v15 = vmul.f32 %v4890_v33, %v4905_v39 }
 0x78c   :  { %v2583_v40 = vadd.f32 %v2567_v8, %v4778_v19  ;;  %v2569_v12 = vmax.f32 %v2537_v5, %v2553_v37  ;;  %v2540_v43 = vadd.f32 %v4921_v22, %v2518_v47 }
 0x78d   :  { %v2584_v7 = vadd.f32 %v2568_v36, %v4782_v17  ;;  %v2570_v51 = vmax.f32 %v2538_v13, %v2554_v25  ;;  %v2541_v54 = vadd.f32 %v4921_v22, %v2519_v15 }
 0x78e   :  { %v2611_v42 = vpack.c.bf16 %v2583_v40, %v2582_v52  ;;  %v2585_v30 = vadd.f32 %v2569_v12, %v4786_v11  ;;  %v2556_v41 = vmul.f32 0.01, %v2540_v43  ;;  %v2858_v11 = vld [vmem:[%s5043_s20] ss:$0 sm:$0xff] }
 0x78f   :  { %v2586_v55 = vadd.f32 %v2570_v51, %v4790_v28  ;;  %v2557_v23 = vmul.f32 0.01, %v2541_v54 }
 0x790   :  { %v2612_v3 = vpack.c.bf16 %v2585_v30, %v2584_v7  ;;  %v2572_v56 = vmax.f32 %v2540_v43, %v2556_v41 }
 0x791   :  { %3048 = vmatmul.mubr.bf16.gmra.mrb[68].mxu1 %v2610_v63  ;;  %v2613_v33 = vpack.c.bf16 %v2587_v1, %v2586_v55  ;;  %v2573_v19 = vmax.f32 %v2541_v54, %v2557_v23 }
 0x792   :  { %3051 = vmatprep.mubr.bf16.mxu1 %v2611_v42  ;;  %v2588_v39 = vadd.f32 %v2572_v56, %v4798_v60 }
 0x793   :  { %v2589_v17 = vadd.f32 %v2573_v19, %v4802_v32 }
 0x795   :  { %v2614_v4 = vpack.c.bf16 %v2589_v17, %v2588_v39 }
 0x799   :  { %3052 = vmatmul.mubr.bf16.gmra.mrb[72].mxu1 %v2612_v3 }
 0x79a   :  { %3055 = vmatprep.mubr.bf16.mxu1 %v2613_v33 }
 0x7a1   :  { %3056 = vmatmul.mubr.bf16.gmra.mrb[76].mxu1 %v2614_v4 }
 0x85c   :  { %v3045_v28 = vpop.f32.mrb[64].mxu1 }
 0x85d   :  { %v2712_v22 = vadd.f32 %v3045_v28, %v2858_v11  ;;  %v2703_v2 = vpop.f32.mrb[65].mxu1 }
 0x85e   :  { %v2704_v29 = vadd.f32 %v2858_v11, %v2703_v2  ;;  %v3046_v0 = vpop.f32.mrb[66].mxu1 }
 0x85f   :  { %2768 = vst [vmem:[%s5044_s21 + $0x10] sm:$0xff] %v2712_v22  ;;  %v2715_v60 = vadd.f32 %v3046_v0, %v2858_v11  ;;  %v2706_v44 = vpop.f32.mrb[67].mxu1 }
 0x860   :  { %2766 = vst [vmem:[%s5044_s21] sm:$0xff] %v2704_v29  ;;  %v2707_v32 = vadd.f32 %v2858_v11, %v2706_v44 }
 0x861   :  { %2769 = vst [vmem:[%s5044_s21 + $0x18] sm:$0xff] %v2715_v60 }
 0x862   :  { %2767 = vst [vmem:[%s5044_s21 + $0x8] sm:$0xff] %v2707_v32 }
 0x864   :  { %v3049_v9 = vpop.f32.mrb[68].mxu1 }
 0x865   :  { %v2728_v6 = vadd.f32 %v3049_v9, %v2858_v11  ;;  %v2719_v45 = vpop.f32.mrb[69].mxu1 }
 0x866   :  { %v2720_v61 = vadd.f32 %v2858_v11, %v2719_v45  ;;  %v3050_v14 = vpop.f32.mrb[70].mxu1 }
 0x867   :  { %2772 = vst [vmem:[%s5044_s21 + $0x30] sm:$0xff] %v2728_v6  ;;  %v2731_v48 = vadd.f32 %v3050_v14, %v2858_v11  ;;  %v2722_v59 = vpop.f32.mrb[71].mxu1 }
 0x868   :  { %2770 = vst [vmem:[%s5044_s21 + $0x20] sm:$0xff] %v2720_v61  ;;  %v2723_v49 = vadd.f32 %v2858_v11, %v2722_v59 }
 0x869   :  { %2773 = vst [vmem:[%s5044_s21 + $0x38] sm:$0xff] %v2731_v48 }
 0x86a   :  { %2771 = vst [vmem:[%s5044_s21 + $0x28] sm:$0xff] %v2723_v49 }
 0x86c   :  { %v3053_v57 = vpop.f32.mrb[72].mxu1 }
 0x86d   :  { %v2744_v53 = vadd.f32 %v3053_v57, %v2858_v11  ;;  %v2735_v27 = vpop.f32.mrb[73].mxu1 }
 0x86e   :  { %v2736_v20 = vadd.f32 %v2858_v11, %v2735_v27  ;;  %v3054_v26 = vpop.f32.mrb[74].mxu1 }
 0x86f   :  { %2776 = vst [vmem:[%s5044_s21 + $0x50] sm:$0xff] %v2744_v53  ;;  %v2747_v46 = vadd.f32 %v3054_v26, %v2858_v11  ;;  %v2738_v34 = vpop.f32.mrb[75].mxu1 }
 0x870   :  { %2774 = vst [vmem:[%s5044_s21 + $0x40] sm:$0xff] %v2736_v20  ;;  %v2739_v24 = vadd.f32 %v2858_v11, %v2738_v34 }
 0x871   :  { %2777 = vst [vmem:[%s5044_s21 + $0x58] sm:$0xff] %v2747_v46 }
 0x872   :  { %2775 = vst [vmem:[%s5044_s21 + $0x48] sm:$0xff] %v2739_v24 }
 0x874   :  { %v3057_v38 = vpop.f32.mrb[76].mxu1 }
 0x875   :  { %v2760_v16 = vadd.f32 %v3057_v38, %v2858_v11  ;;  %v2751_v58 = vpop.f32.mrb[77].mxu1 }
 0x876   :  { %v2752_v50 = vadd.f32 %v2858_v11, %v2751_v58  ;;  %v3058_v18 = vpop.f32.mrb[78].mxu1 }
 0x877   :  { %2780 = vst [vmem:[%s5044_s21 + $0x70] sm:$0xff] %v2760_v16  ;;  %v2763_v10 = vadd.f32 %v3058_v18, %v2858_v11  ;;  %v2754_v31 = vpop.f32.mrb[79].mxu1 }
 0x878   :  { %2778 = vst [vmem:[%s5044_s21 + $0x60] sm:$0xff] %v2752_v50  ;;  %v2755_v21 = vadd.f32 %v2858_v11, %v2754_v31 }
 0x879   :  { %2781 = vst [vmem:[%s5044_s21 + $0x78] sm:$0xff] %v2763_v10 }
 0x87a   :  { %2779 = vst [vmem:[%s5044_s21 + $0x68] sm:$0xff] %v2755_v21 }

</bundles_post_ra>
